<compile_context>
chip_gen: v6e
topology: v6e:2x2x1
jax: 0.10.0
libtpu: 0.0.40
codegen_flags: <defaults>
</compile_context>

<pallas_src>
from functools import partial

import jax
import jax.numpy as jnp
from jax.experimental import pallas as pl
from jax.experimental.pallas import tpu as pltpu


def _round_up(x, m):
    return (x + m - 1) // m * m


def _pick_tile_h(h_out, w_out, max_rows=512):
    """Largest divisor of h_out keeping tile rows (tile_h * w_out) <= max_rows."""
    best = 1
    for th in range(1, h_out + 1):
        if h_out % th == 0 and th * w_out <= max_rows:
            best = th
    return best


def _conv_stats_kernel(x_ref, w_ref, out_ref, stats_ref, im2col_ref,
                       *, KH, KW, TILE_H, W_OUT, CIN_P):
    # x_ref:      (1, 1, TILE_H+KH-1, W_OUT+KW-1, CIN_P)   halo'd input tile
    # w_ref:      (KH*KW*CIN_P, COUT_P)                    conv weight (im2col layout)
    # out_ref:    (1, TILE_H, W_OUT, COUT_P)               f32 conv output tile
    # stats_ref:  (1, 1, 2, COUT_P)                        [sum ; sum of squares]
    # im2col_ref: (TILE_H*W_OUT, KH*KW*CIN_P)              VMEM scratch
    rows = TILE_H * W_OUT

    # Build the im2col slab once per tile (static unrolled taps), then do a
    # single deep-K MXU matmul instead of KH*KW shallow ones.
    for kh in range(KH):
        for kw in range(KW):
            tap = kh * KW + kw
            patch = x_ref[0, 0, kh:kh + TILE_H, kw:kw + W_OUT, :]
            im2col_ref[:, tap * CIN_P:(tap + 1) * CIN_P] = patch.reshape(rows, CIN_P)

    # Operands stay in their native dtype (bf16-friendly); accumulate in f32.
    acc = jnp.dot(im2col_ref[...], w_ref[...], preferred_element_type=jnp.float32)

    out_ref[...] = acc.reshape(1, TILE_H, W_OUT, -1).astype(out_ref.dtype)

    # Per-tile BN partial statistics (reduced across the grid in the wrapper,
    # keeping every grid axis "parallel").
    stats_ref[0, 0, 0:1, :] = jnp.sum(acc, axis=0, keepdims=True)
    stats_ref[0, 0, 1:2, :] = jnp.sum(acc * acc, axis=0, keepdims=True)


def _bn_relu_kernel(y_ref, scale_ref, shift_ref, o_ref):
    # y_ref:  (1, TILE_H, W_OUT, COUT_P) f32 conv tile
    # scale/shift: (1, COUT_P) folded BN parameters
    y = y_ref[...]
    scale = scale_ref[...].reshape(1, 1, 1, -1)
    shift = shift_ref[...].reshape(1, 1, 1, -1)
    o_ref[...] = jnp.maximum(y * scale + shift, 0.0).astype(o_ref.dtype)


def block_forward(x_nchw, w, b, gamma, beta, *, padding=1, stride=1, eps=1e-5,
                  tile_h=None):
    """x_nchw: (N, Cin, H, W); w: (Cout, Cin, KH, KW); b/gamma/beta: (Cout,)."""
    assert stride == 1  # TODO(synk): stride>1 not needed for this module's defaults
    N, Cin, H, W = x_nchw.shape
    Cout, _, KH, KW = w.shape
    H_out = H + 2 * padding - KH + 1
    W_out = W + 2 * padding - KW + 1

    CIN_P = _round_up(Cin, 8)        # contraction granule
    COUT_P = _round_up(Cout, 128)    # lane-dense output channels
    K = KH * KW * CIN_P

    if tile_h is None:
        tile_h = _pick_tile_h(H_out, W_out)
    assert H_out % tile_h == 0, (H_out, tile_h)
    T = H_out // tile_h
    rows = tile_h * W_out
    in_dtype = x_nchw.dtype

    # ---- glue: NCHW->NHWC, channel+spatial zero pad, duplicate per-tile halos ----
    x_nhwc = jnp.transpose(x_nchw, (0, 2, 3, 1))
    xp = jnp.pad(x_nhwc, ((0, 0), (padding, padding), (padding, padding),
                          (0, CIN_P - Cin)))
    # TODO(synk): the halo-duplicated copy costs one extra HBM round trip of the
    # input; could be removed with in-kernel manual halo DMA if input-BW bound.
    row_idx = (jnp.arange(T)[:, None] * tile_h
               + jnp.arange(tile_h + KH - 1)[None, :])
    x_tiles = xp[:, row_idx]          # (N, T, tile_h+KH-1, W_out+KW-1, CIN_P)

    # Weight relayout: (Cout,Cin,KH,KW) -> (KH*KW*CIN_P, COUT_P); K order = (kh,kw,c).
    w_t = jnp.transpose(w, (2, 3, 1, 0)).astype(in_dtype)
    w_t = jnp.pad(w_t, ((0, 0), (0, 0), (0, CIN_P - Cin), (0, COUT_P - Cout)))
    w_mat = w_t.reshape(K, COUT_P)

    cparams = pltpu.CompilerParams(
        dimension_semantics=("parallel", "parallel"),
        vmem_limit_bytes=32 * 1024 * 1024,
    )

    # ---- pass 1: tiled conv (one K=KH*KW*Cin matmul per tile) + BN partial stats ----
    conv_out, stats = pl.pallas_call(
        partial(_conv_stats_kernel, KH=KH, KW=KW, TILE_H=tile_h, W_OUT=W_out,
                CIN_P=CIN_P),
        grid=(N, T),
        in_specs=[
            pl.BlockSpec((1, 1, tile_h + KH - 1, W_out + KW - 1, CIN_P),
                         lambda n, t: (n, t, 0, 0, 0)),
            pl.BlockSpec((K, COUT_P), lambda n, t: (0, 0)),
        ],
        out_specs=[
            pl.BlockSpec((1, tile_h, W_out, COUT_P), lambda n, t: (n, t, 0, 0)),
            pl.BlockSpec((1, 1, 2, COUT_P), lambda n, t: (n, t, 0, 0)),
        ],
        out_shape=[
            jax.ShapeDtypeStruct((N, H_out, W_out, COUT_P), jnp.float32),
            jax.ShapeDtypeStruct((N, T, 2, COUT_P), jnp.float32),
        ],
        scratch_shapes=[pltpu.VMEM((rows, K), in_dtype)],
        compiler_params=cparams,
    )(x_tiles, w_mat)

    # ---- fold BN (train-mode, biased variance) into per-channel scale/shift ----
    # Conv bias `b` is intentionally unused: the batch-mean subtraction of
    # train-mode BN cancels a per-channel constant bias exactly.
    count = float(N * H_out * W_out)
    tot = jnp.sum(stats, axis=(0, 1))                         # (2, COUT_P) f32
    mean = tot[0] / count
    var = jnp.maximum(tot[1] / count - mean * mean, 0.0)      # biased variance
    inv_std = jax.lax.rsqrt(var + eps)
    gamma_p = jnp.pad(gamma.astype(jnp.float32), (0, COUT_P - Cout))
    beta_p = jnp.pad(beta.astype(jnp.float32), (0, COUT_P - Cout))
    scale = (gamma_p * inv_std).reshape(1, COUT_P)
    shift = (beta_p - mean * gamma_p * inv_std).reshape(1, COUT_P)

    # ---- pass 2: fused scale/shift + ReLU epilogue (lane-dense) ----
    out_nhwc = pl.pallas_call(
        _bn_relu_kernel,
        grid=(N, T),
        in_specs=[
            pl.BlockSpec((1, tile_h, W_out, COUT_P), lambda n, t: (n, t, 0, 0)),
            pl.BlockSpec((1, COUT_P), lambda n, t: (0, 0)),
            pl.BlockSpec((1, COUT_P), lambda n, t: (0, 0)),
        ],
        out_specs=pl.BlockSpec((1, tile_h, W_out, COUT_P),
                               lambda n, t: (n, t, 0, 0)),
        out_shape=jax.ShapeDtypeStruct((N, H_out, W_out, COUT_P), in_dtype),
        compiler_params=cparams,
    )(conv_out, scale, shift)

    # Crop channel padding and return NCHW like the PyTorch module.
    return jnp.transpose(out_nhwc[..., :Cout], (0, 3, 1, 2))


def _reference_forward(x_nchw, w, b, gamma, beta, eps=1e-5):
    """Pure-JAX reference (NCHW conv + train-mode BN + ReLU)."""
    out = jax.lax.conv_general_dilated(
        x_nchw, w, window_strides=(1, 1), padding=((1, 1), (1, 1)),
        dimension_numbers=("NCHW", "OIHW", "NCHW"),
    ) + b.reshape(1, -1, 1, 1)
    mean = jnp.mean(out, axis=(0, 2, 3), keepdims=True)
    var = jnp.mean(jnp.square(out - mean), axis=(0, 2, 3), keepdims=True)
    out = (out - mean) * jax.lax.rsqrt(var + eps)
    out = out * gamma.reshape(1, -1, 1, 1) + beta.reshape(1, -1, 1, 1)
    return jnp.maximum(out, 0.0)


if __name__ == "__main__":
    # Small shapes consistent with Block(in_ch, out_ch, 3, padding=1, stride=1).
    configs = [
        # (N, Cin, Cout, H, W, tile_h) — tile_h chosen so T>1 exercises the halo path
        (2, 4, 8, 16, 16, 8),
        (1, 3, 5, 20, 12, 5),
    ]
    key = jax.random.PRNGKey(0)
    for (N, Cin, Cout, H, W, th) in configs:
        key, k_x, k_w, k_b, k_g, k_beta = jax.random.split(key, 6)
        x = jax.random.normal(k_x, (N, Cin, H, W), dtype=jnp.float32)
        fan_in = Cin * 3 * 3
        bound = 1.0 / (fan_in ** 0.5)
        w = jax.random.uniform(k_w, (Cout, Cin, 3, 3), jnp.float32, -bound, bound)
        b = jax.random.uniform(k_b, (Cout,), jnp.float32, -bound, bound)
        gamma = 1.0 + 0.1 * jax.random.normal(k_g, (Cout,), jnp.float32)
        beta = 0.1 * jax.random.normal(k_beta, (Cout,), jnp.float32)

        fwd = jax.jit(partial(block_forward, tile_h=th))
        out = jax.block_until_ready(fwd(x, w, b, gamma, beta))
        ref = jax.block_until_ready(_reference_forward(x, w, b, gamma, beta))

        assert out.shape == ref.shape == (N, Cout, H, W), (out.shape, ref.shape)
        err = float(jnp.max(jnp.abs(out - ref)))
        assert err < 1e-4, err

    print("KERNEL_OK")
</pallas_src>

<mosaic_0001>
module attributes {stable_mosaic.version = 11 : i64} {
  func.func @_conv_stats_kernel(%arg0: i32, %arg1: i32, %arg2: memref<1x1x10x18x8xf32, #tpu.memory_space<vmem>>, %arg3: memref<72x128xf32, #tpu.memory_space<vmem>>, %arg4: memref<1x8x16x128xf32, #tpu.memory_space<vmem>>, %arg5: memref<1x1x2x128xf32, #tpu.memory_space<vmem>>, %arg6: memref<128x72xf32, #tpu.memory_space<vmem>>) attributes {dimension_semantics = [#tpu.dimension_semantics<parallel>, #tpu.dimension_semantics<parallel>], iteration_bounds = array<i64: 2, 2>, scalar_prefetch = 0 : i64, scratch_operands = 1 : i64, tpu.core_type = #tpu.core_type<tc>, window_params = [{transform_indices = @transform_0, window_bounds = array<i64: 1, 1, 10, 18, 8>}, {pipeline_mode = #tpu.pipeline_mode<synchronous>, transform_indices = @transform_1, window_bounds = array<i64: 72, 128>}, {transform_indices = @transform_2, window_bounds = array<i64: 1, 8, 16, 128>}, {transform_indices = @transform_3, window_bounds = array<i64: 1, 1, 2, 128>}]} {
    %c0 = arith.constant 0 : index
    %c0_0 = arith.constant 0 : index
    %c0_1 = arith.constant 0 : index
    %c0_2 = arith.constant 0 : index
    %c0_3 = arith.constant 0 : index
    %0 = vector.load %arg2[%c0, %c0_0, %c0_1, %c0_2, %c0_3] : memref<1x1x10x18x8xf32, #tpu.memory_space<vmem>>, vector<1x1x8x16x8xf32>
    %1 = vector.shape_cast %0 : vector<1x1x8x16x8xf32> to vector<8x16x8xf32>
    %2 = vector.shape_cast %1 : vector<8x16x8xf32> to vector<128x8xf32>
    %c0_4 = arith.constant 0 : index
    %c0_5 = arith.constant 0 : index
    %3 = vector.load %arg6[%c0_4, %c0_5] : memref<128x72xf32, #tpu.memory_space<vmem>>, vector<128x8xf32>
    tpu.vector_store %arg6[%c0_4, %c0_5], %2 {strides = array<i32>} : memref<128x72xf32, #tpu.memory_space<vmem>>, vector<128x8xf32>,
    %c0_6 = arith.constant 0 : index
    %c0_7 = arith.constant 0 : index
    %c0_8 = arith.constant 0 : index
    %c1 = arith.constant 1 : index
    %c0_9 = arith.constant 0 : index
    %4 = vector.load %arg2[%c0_6, %c0_7, %c0_8, %c1, %c0_9] : memref<1x1x10x18x8xf32, #tpu.memory_space<vmem>>, vector<1x1x8x16x8xf32>
    %5 = vector.shape_cast %4 : vector<1x1x8x16x8xf32> to vector<8x16x8xf32>
    %6 = vector.shape_cast %5 : vector<8x16x8xf32> to vector<128x8xf32>
    %c0_10 = arith.constant 0 : index
    %c8 = arith.constant 8 : index
    %7 = vector.load %arg6[%c0_10, %c8] : memref<128x72xf32, #tpu.memory_space<vmem>>, vector<128x8xf32>
    tpu.vector_store %arg6[%c0_10, %c8], %6 {strides = array<i32>} : memref<128x72xf32, #tpu.memory_space<vmem>>, vector<128x8xf32>,
    %c0_11 = arith.constant 0 : index
    %c0_12 = arith.constant 0 : index
    %c0_13 = arith.constant 0 : index
    %c2 = arith.constant 2 : index
    %c0_14 = arith.constant 0 : index
    %8 = vector.load %arg2[%c0_11, %c0_12, %c0_13, %c2, %c0_14] : memref<1x1x10x18x8xf32, #tpu.memory_space<vmem>>, vector<1x1x8x16x8xf32>
    %9 = vector.shape_cast %8 : vector<1x1x8x16x8xf32> to vector<8x16x8xf32>
    %10 = vector.shape_cast %9 : vector<8x16x8xf32> to vector<128x8xf32>
    %c0_15 = arith.constant 0 : index
    %c16 = arith.constant 16 : index
    %11 = vector.load %arg6[%c0_15, %c16] : memref<128x72xf32, #tpu.memory_space<vmem>>, vector<128x8xf32>
    tpu.vector_store %arg6[%c0_15, %c16], %10 {strides = array<i32>} : memref<128x72xf32, #tpu.memory_space<vmem>>, vector<128x8xf32>,
    %c0_16 = arith.constant 0 : index
    %c0_17 = arith.constant 0 : index
    %c1_18 = arith.constant 1 : index
    %c0_19 = arith.constant 0 : index
    %c0_20 = arith.constant 0 : index
    %12 = vector.load %arg2[%c0_16, %c0_17, %c1_18, %c0_19, %c0_20] : memref<1x1x10x18x8xf32, #tpu.memory_space<vmem>>, vector<1x1x8x16x8xf32>
    %13 = vector.shape_cast %12 : vector<1x1x8x16x8xf32> to vector<8x16x8xf32>
    %14 = vector.shape_cast %13 : vector<8x16x8xf32> to vector<128x8xf32>
    %c0_21 = arith.constant 0 : index
    %c24 = arith.constant 24 : index
    %15 = vector.load %arg6[%c0_21, %c24] : memref<128x72xf32, #tpu.memory_space<vmem>>, vector<128x8xf32>
    tpu.vector_store %arg6[%c0_21, %c24], %14 {strides = array<i32>} : memref<128x72xf32, #tpu.memory_space<vmem>>, vector<128x8xf32>,
    %c0_22 = arith.constant 0 : index
    %c0_23 = arith.constant 0 : index
    %c1_24 = arith.constant 1 : index
    %c1_25 = arith.constant 1 : index
    %c0_26 = arith.constant 0 : index
    %16 = vector.load %arg2[%c0_22, %c0_23, %c1_24, %c1_25, %c0_26] : memref<1x1x10x18x8xf32, #tpu.memory_space<vmem>>, vector<1x1x8x16x8xf32>
    %17 = vector.shape_cast %16 : vector<1x1x8x16x8xf32> to vector<8x16x8xf32>
    %18 = vector.shape_cast %17 : vector<8x16x8xf32> to vector<128x8xf32>
    %c0_27 = arith.constant 0 : index
    %c32 = arith.constant 32 : index
    %19 = vector.load %arg6[%c0_27, %c32] : memref<128x72xf32, #tpu.memory_space<vmem>>, vector<128x8xf32>
    tpu.vector_store %arg6[%c0_27, %c32], %18 {strides = array<i32>} : memref<128x72xf32, #tpu.memory_space<vmem>>, vector<128x8xf32>,
    %c0_28 = arith.constant 0 : index
    %c0_29 = arith.constant 0 : index
    %c1_30 = arith.constant 1 : index
    %c2_31 = arith.constant 2 : index
    %c0_32 = arith.constant 0 : index
    %20 = vector.load %arg2[%c0_28, %c0_29, %c1_30, %c2_31, %c0_32] : memref<1x1x10x18x8xf32, #tpu.memory_space<vmem>>, vector<1x1x8x16x8xf32>
    %21 = vector.shape_cast %20 : vector<1x1x8x16x8xf32> to vector<8x16x8xf32>
    %22 = vector.shape_cast %21 : vector<8x16x8xf32> to vector<128x8xf32>
    %c0_33 = arith.constant 0 : index
    %c40 = arith.constant 40 : index
    %23 = vector.load %arg6[%c0_33, %c40] : memref<128x72xf32, #tpu.memory_space<vmem>>, vector<128x8xf32>
    tpu.vector_store %arg6[%c0_33, %c40], %22 {strides = array<i32>} : memref<128x72xf32, #tpu.memory_space<vmem>>, vector<128x8xf32>,
    %c0_34 = arith.constant 0 : index
    %c0_35 = arith.constant 0 : index
    %c2_36 = arith.constant 2 : index
    %c0_37 = arith.constant 0 : index
    %c0_38 = arith.constant 0 : index
    %24 = vector.load %arg2[%c0_34, %c0_35, %c2_36, %c0_37, %c0_38] : memref<1x1x10x18x8xf32, #tpu.memory_space<vmem>>, vector<1x1x8x16x8xf32>
    %25 = vector.shape_cast %24 : vector<1x1x8x16x8xf32> to vector<8x16x8xf32>
    %26 = vector.shape_cast %25 : vector<8x16x8xf32> to vector<128x8xf32>
    %c0_39 = arith.constant 0 : index
    %c48 = arith.constant 48 : index
    %27 = vector.load %arg6[%c0_39, %c48] : memref<128x72xf32, #tpu.memory_space<vmem>>, vector<128x8xf32>
    tpu.vector_store %arg6[%c0_39, %c48], %26 {strides = array<i32>} : memref<128x72xf32, #tpu.memory_space<vmem>>, vector<128x8xf32>,
    %c0_40 = arith.constant 0 : index
    %c0_41 = arith.constant 0 : index
    %c2_42 = arith.constant 2 : index
    %c1_43 = arith.constant 1 : index
    %c0_44 = arith.constant 0 : index
    %28 = vector.load %arg2[%c0_40, %c0_41, %c2_42, %c1_43, %c0_44] : memref<1x1x10x18x8xf32, #tpu.memory_space<vmem>>, vector<1x1x8x16x8xf32>
    %29 = vector.shape_cast %28 : vector<1x1x8x16x8xf32> to vector<8x16x8xf32>
    %30 = vector.shape_cast %29 : vector<8x16x8xf32> to vector<128x8xf32>
    %c0_45 = arith.constant 0 : index
    %c56 = arith.constant 56 : index
    %31 = vector.load %arg6[%c0_45, %c56] : memref<128x72xf32, #tpu.memory_space<vmem>>, vector<128x8xf32>
    tpu.vector_store %arg6[%c0_45, %c56], %30 {strides = array<i32>} : memref<128x72xf32, #tpu.memory_space<vmem>>, vector<128x8xf32>,
    %c0_46 = arith.constant 0 : index
    %c0_47 = arith.constant 0 : index
    %c2_48 = arith.constant 2 : index
    %c2_49 = arith.constant 2 : index
    %c0_50 = arith.constant 0 : index
    %32 = vector.load %arg2[%c0_46, %c0_47, %c2_48, %c2_49, %c0_50] : memref<1x1x10x18x8xf32, #tpu.memory_space<vmem>>, vector<1x1x8x16x8xf32>
    %33 = vector.shape_cast %32 : vector<1x1x8x16x8xf32> to vector<8x16x8xf32>
    %34 = vector.shape_cast %33 : vector<8x16x8xf32> to vector<128x8xf32>
    %c0_51 = arith.constant 0 : index
    %c64 = arith.constant 64 : index
    %35 = vector.load %arg6[%c0_51, %c64] : memref<128x72xf32, #tpu.memory_space<vmem>>, vector<128x8xf32>
    tpu.vector_store %arg6[%c0_51, %c64], %34 {strides = array<i32>} : memref<128x72xf32, #tpu.memory_space<vmem>>, vector<128x8xf32>,
    %c0_52 = arith.constant 0 : index
    %c0_53 = arith.constant 0 : index
    %36 = vector.load %arg6[%c0_52, %c0_53] : memref<128x72xf32, #tpu.memory_space<vmem>>, vector<128x72xf32>
    %c0_54 = arith.constant 0 : index
    %c0_55 = arith.constant 0 : index
    %37 = vector.load %arg3[%c0_54, %c0_55] : memref<72x128xf32, #tpu.memory_space<vmem>>, vector<72x128xf32>
    %cst = arith.constant dense<0.000000e+00> : vector<128x128xf32>
    %38 = tpu.matmul %36, %37, %cst {dimension_numbers = #tpu.dot_dimension_numbers<[1], [0], [0], [1], [0, 0, 1, 1], [], []>} : vector<128x72xf32>, vector<72x128xf32>, vector<128x128xf32> -> vector<128x128xf32>
    %39 = vector.shape_cast %38 : vector<128x128xf32> to vector<1x8x16x128xf32>
    %c0_56 = arith.constant 0 : index
    %c0_57 = arith.constant 0 : index
    %c0_58 = arith.constant 0 : index
    %c0_59 = arith.constant 0 : index
    %40 = vector.load %arg4[%c0_56, %c0_57, %c0_58, %c0_59] : memref<1x8x16x128xf32, #tpu.memory_space<vmem>>, vector<1x8x16x128xf32>
    tpu.vector_store %arg4[%c0_56, %c0_57, %c0_58, %c0_59], %39 {strides = array<i32>} : memref<1x8x16x128xf32, #tpu.memory_space<vmem>>, vector<1x8x16x128xf32>,
    %cst_60 = arith.constant dense<0.000000e+00> : vector<128xf32>
    %41 = vector.multi_reduction <add>, %38, %cst_60 [0] : vector<128x128xf32> to vector<128xf32>
    %42 = vector.shape_cast %41 : vector<128xf32> to vector<1x128xf32>
    %c0_61 = arith.constant 0 : index
    %c0_62 = arith.constant 0 : index
    %c0_63 = arith.constant 0 : index
    %c0_64 = arith.constant 0 : index
    %43 = vector.load %arg5[%c0_61, %c0_62, %c0_63, %c0_64] : memref<1x1x2x128xf32, #tpu.memory_space<vmem>>, vector<1x1x1x128xf32>
    %44 = vector.shape_cast %43 : vector<1x1x1x128xf32> to vector<1x128xf32>
    %45 = vector.shape_cast %42 : vector<1x128xf32> to vector<1x1x1x128xf32>
    tpu.vector_store %arg5[%c0_61, %c0_62, %c0_63, %c0_64], %45 {strides = array<i32>} : memref<1x1x2x128xf32, #tpu.memory_space<vmem>>, vector<1x1x1x128xf32>,
    %46 = arith.mulf %38, %38 : vector<128x128xf32>
    %cst_65 = arith.constant dense<0.000000e+00> : vector<128xf32>
    %47 = vector.multi_reduction <add>, %46, %cst_65 [0] : vector<128x128xf32> to vector<128xf32>
    %48 = vector.shape_cast %47 : vector<128xf32> to vector<1x128xf32>
    %c0_66 = arith.constant 0 : index
    %c0_67 = arith.constant 0 : index
    %c1_68 = arith.constant 1 : index
    %c0_69 = arith.constant 0 : index
    %49 = vector.load %arg5[%c0_66, %c0_67, %c1_68, %c0_69] : memref<1x1x2x128xf32, #tpu.memory_space<vmem>>, vector<1x1x1x128xf32>
    %50 = vector.shape_cast %49 : vector<1x1x1x128xf32> to vector<1x128xf32>
    %51 = vector.shape_cast %48 : vector<1x128xf32> to vector<1x1x1x128xf32>
    tpu.vector_store %arg5[%c0_66, %c0_67, %c1_68, %c0_69], %51 {strides = array<i32>} : memref<1x1x2x128xf32, #tpu.memory_space<vmem>>, vector<1x1x1x128xf32>,
    return
  }
  func.func @transform_0(%arg0: i32, %arg1: i32) -> (i32, i32, i32, i32, i32) {
    %c0_i32 = arith.constant 0 : i32
    %c0_i32_0 = arith.constant 0 : i32
    %c0_i32_1 = arith.constant 0 : i32
    %c0_i32_2 = arith.constant 0 : i32
    return %arg0, %arg1, %c0_i32, %c0_i32_0, %c0_i32_1 : i32, i32, i32, i32, i32
  }
  func.func @transform_1(%arg0: i32, %arg1: i32) -> (i32, i32) {
    %c0_i32 = arith.constant 0 : i32
    %c0_i32_0 = arith.constant 0 : i32
    %c0_i32_1 = arith.constant 0 : i32
    return %c0_i32, %c0_i32_0 : i32, i32
  }
  func.func @transform_2(%arg0: i32, %arg1: i32) -> (i32, i32, i32, i32) {
    %c0_i32 = arith.constant 0 : i32
    %c0_i32_0 = arith.constant 0 : i32
    %c0_i32_1 = arith.constant 0 : i32
    return %arg0, %arg1, %c0_i32, %c0_i32_0 : i32, i32, i32, i32
  }
  func.func @transform_3(%arg0: i32, %arg1: i32) -> (i32, i32, i32, i32) {
    %c0_i32 = arith.constant 0 : i32
    %c0_i32_0 = arith.constant 0 : i32
    %c0_i32_1 = arith.constant 0 : i32
    return %arg0, %arg1, %c0_i32, %c0_i32_0 : i32, i32, i32, i32
  }
}

module attributes {stable_mosaic.version = 11 : i64} {
  func.func @_bn_relu_kernel(%arg0: i32, %arg1: i32, %arg2: memref<1x8x16x128xf32, #tpu.memory_space<vmem>>, %arg3: memref<1x128xf32, #tpu.memory_space<vmem>>, %arg4: memref<1x128xf32, #tpu.memory_space<vmem>>, %arg5: memref<1x8x16x128xf32, #tpu.memory_space<vmem>>) attributes {dimension_semantics = [#tpu.dimension_semantics<parallel>, #tpu.dimension_semantics<parallel>], iteration_bounds = array<i64: 2, 2>, scalar_prefetch = 0 : i64, scratch_operands = 0 : i64, tpu.core_type = #tpu.core_type<tc>, window_params = [{transform_indices = @transform_0, window_bounds = array<i64: 1, 8, 16, 128>}, {pipeline_mode = #tpu.pipeline_mode<synchronous>, transform_indices = @transform_1, window_bounds = array<i64: 1, 128>}, {pipeline_mode = #tpu.pipeline_mode<synchronous>, transform_indices = @transform_2, window_bounds = array<i64: 1, 128>}, {transform_indices = @transform_3, window_bounds = array<i64: 1, 8, 16, 128>}]} {
    %c0 = arith.constant 0 : index
    %c0_0 = arith.constant 0 : index
    %c0_1 = arith.constant 0 : index
    %c0_2 = arith.constant 0 : index
    %0 = vector.load %arg2[%c0, %c0_0, %c0_1, %c0_2] : memref<1x8x16x128xf32, #tpu.memory_space<vmem>>, vector<1x8x16x128xf32>
    %c0_3 = arith.constant 0 : index
    %c0_4 = arith.constant 0 : index
    %1 = vector.load %arg3[%c0_3, %c0_4] : memref<1x128xf32, #tpu.memory_space<vmem>>, vector<1x128xf32>
    %2 = vector.shape_cast %1 : vector<1x128xf32> to vector<1x1x1x128xf32>
    %c0_5 = arith.constant 0 : index
    %c0_6 = arith.constant 0 : index
    %3 = vector.load %arg4[%c0_5, %c0_6] : memref<1x128xf32, #tpu.memory_space<vmem>>, vector<1x128xf32>
    %4 = vector.shape_cast %3 : vector<1x128xf32> to vector<1x1x1x128xf32>
    %5 = vector.broadcast %2 : vector<1x1x1x128xf32> to vector<1x8x16x128xf32>
    %6 = arith.mulf %0, %5 : vector<1x8x16x128xf32>
    %7 = vector.broadcast %4 : vector<1x1x1x128xf32> to vector<1x8x16x128xf32>
    %8 = arith.addf %6, %7 : vector<1x8x16x128xf32>
    %cst = arith.constant 0.000000e+00 : f32
    %9 = vector.broadcast %cst : f32 to vector<1x8x16x128xf32>
    %10 = arith.maximumf %8, %9 : vector<1x8x16x128xf32>
    %c0_7 = arith.constant 0 : index
    %c0_8 = arith.constant 0 : index
    %c0_9 = arith.constant 0 : index
    %c0_10 = arith.constant 0 : index
    %11 = vector.load %arg5[%c0_7, %c0_8, %c0_9, %c0_10] : memref<1x8x16x128xf32, #tpu.memory_space<vmem>>, vector<1x8x16x128xf32>
    tpu.vector_store %arg5[%c0_7, %c0_8, %c0_9, %c0_10], %10 {strides = array<i32>} : memref<1x8x16x128xf32, #tpu.memory_space<vmem>>, vector<1x8x16x128xf32>,
    return
  }
  func.func @transform_0(%arg0: i32, %arg1: i32) -> (i32, i32, i32, i32) {
    %c0_i32 = arith.constant 0 : i32
    %c0_i32_0 = arith.constant 0 : i32
    %c0_i32_1 = arith.constant 0 : i32
    return %arg0, %arg1, %c0_i32, %c0_i32_0 : i32, i32, i32, i32
  }
  func.func @transform_1(%arg0: i32, %arg1: i32) -> (i32, i32) {
    %c0_i32 = arith.constant 0 : i32
    %c0_i32_0 = arith.constant 0 : i32
    %c0_i32_1 = arith.constant 0 : i32
    return %c0_i32, %c0_i32_0 : i32, i32
  }
  func.func @transform_2(%arg0: i32, %arg1: i32) -> (i32, i32) {
    %c0_i32 = arith.constant 0 : i32
    %c0_i32_0 = arith.constant 0 : i32
    %c0_i32_1 = arith.constant 0 : i32
    return %c0_i32, %c0_i32_0 : i32, i32
  }
  func.func @transform_3(%arg0: i32, %arg1: i32) -> (i32, i32, i32, i32) {
    %c0_i32 = arith.constant 0 : i32
    %c0_i32_0 = arith.constant 0 : i32
    %c0_i32_1 = arith.constant 0 : i32
    return %arg0, %arg1, %c0_i32, %c0_i32_0 : i32, i32, i32, i32
  }
}

</mosaic_0001>

<bundles_post_ra>
// kernel: block_forward.3
= control target key start
LH: loop header
LB: loop body
LE: loop exit
PB: predicated region body
PF: predicated region fallthrough
CT: control target
= control target key end

     0   :  { %s525_s12 = smov 0   ;;  %s527_s13 = smov 0   ;;  %s654_s0 = inlined_call_operand.vmem [shape: f32[2,16,16,128], index: 0, kind: input, shape index: {}]   ;;  %s655_s1 = inlined_call_operand.vmem [shape: f32[1,128], index: 1, kind: input, shape index: {}]   ;;  %s656_s2 = inlined_call_operand.vmem [shape: f32[1,128], index: 2, kind: input, shape index: {}]   ;;  %s657_s3 = inlined_call_operand.vmem [shape: f32[2,16,16,128], index: 3, kind: output, shape index: {}]  }
   0x1   :  { %s529_s14 = smov 0   ;;  %s531_s15 = smov 0  }
   0x2   :  { %s533_s16 = smov 0  }
   0x3 LB: > { %s22_s17 = sadd.s32 1, %s495_s14  ;;  %s25_s18 = sadd.s32 1, %s499_s15  ;;  %s503_s16 = sphi %s533_s16, %s13_s16   ;;  %s499_s15 = sphi %s531_s15, %s661_s15   ;;  %s495_s14 = sphi %s529_s14, %s660_s14   ;;  %s491_s13 = sphi %s527_s13, %s659_s13   ;;  %s487_s12 = sphi %s525_s12, %s658_s12  }
   0x4   : > { %p23_p0 = scmp.ge.s32.totalorder %s22_s17, 2  ;;  %p412_p1 = scmp.ge.s32.totalorder %s503_s16, 1 }
   0x5   : > { %p159_p2 = scmp.lt.s32.totalorder %s503_s16, 5 }
   0x6   : > { %s663_s17 = smov (%p23_p0, %s22_s17), 0  ;;  %s665_s18 = smov (!%p23_p0, %s25_s18), %s499_s15 }
   0x7   : > { %p160_p3 = pnand %p412_p1, %p159_p2  ;;  %p27_p4 = scmp.ge.s32.totalorder %s665_s18, 2 }
   0x8   : > { %s413_s19 = sshll.u32 (!%p160_p3), %s487_s12, 3  ;;  %p194_p5 = scmp.lt.s32.totalorder (!%p160_p3), %s491_s13, 1 }
   0x9   : > { %s667_s18 = smov (%p27_p4, %s665_s18), 0  ;;  %163 = sbr.rel (%p160_p3) target bundleno = 37 (0x25), region = 32 }
   0xa   : > { %p196_p6 = scmp.lt.s32.totalorder (!%p160_p3), %s413_s19, 15 }
   0xe   : > { %s669_s13 = smov (!%p194_p5, %s491_s13), 1  ;;  %s671_s19 = smov (!%p196_p6, %s413_s19), 15  ;;  %v558_v0 = vld [vmem:[%s655_s1] ss:$0 sm:$0xff] }
   0xf   : > { %s415_s20 = sshll.u32 %s669_s13, 5  ;;  %s414_s21 = sshll.u32 %s671_s19, 1  ;;  %v568_v1 = vld [vmem:[%s656_s2] ss:$0 sm:$0xff] }
  0x10   : > { %s200_s22 = sadd.s32 %s415_s20, %s414_s21 }
  0x11   : > { %s416_s23 = sshll.u32 %s200_s22, 3 }
  0x12   : > { %s563_s28 = scalar_lea.vmem %s654_s0, %s416_s23  ;;  %s591_s6 = scalar_lea.vmem %s657_s3, %s416_s23 }
  0x13   : > { %v215_v2 = vld [vmem:[%s563_s28] sm:$0xff]  ;;  %v216_v3 = vld [vmem:[%s563_s28 + $0x8] sm:$0xff]  ;;  %v217_v4 = vld [vmem:[%s563_s28 + $0x10] sm:$0xff] }
  0x14   : > { %v239_v5 = vmul.f32 %v558_v0, %v215_v2  ;;  %v240_v6 = vmul.f32 %v558_v0, %v216_v3  ;;  %v241_v7 = vmul.f32 %v558_v0, %v217_v4  ;;  %v218_v8 = vld [vmem:[%s563_s28 + $0x18] sm:$0xff]  ;;  %v219_v9 = vld [vmem:[%s563_s28 + $0x20] sm:$0xff]  ;;  %v220_v10 = vld [vmem:[%s563_s28 + $0x28] sm:$0xff] }
  0x15   : > { %v242_v11 = vmul.f32 %v558_v0, %v218_v8  ;;  %v243_v12 = vmul.f32 %v558_v0, %v219_v9  ;;  %v244_v13 = vmul.f32 %v558_v0, %v220_v10  ;;  %v221_v14 = vld [vmem:[%s563_s28 + $0x30] sm:$0xff]  ;;  %v222_v15 = vld [vmem:[%s563_s28 + $0x38] sm:$0xff]  ;;  %v223_v24 = vld [vmem:[%s563_s28 + $0x40] sm:$0xff] }
  0x16   : > { %v261_v16 = vadd.f32 %v568_v1, %v239_v5  ;;  %v262_v17 = vadd.f32 %v568_v1, %v240_v6  ;;  %v263_v18 = vadd.f32 %v568_v1, %v241_v7  ;;  %v245_v19 = vmul.f32 %v558_v0, %v221_v14  ;;  %v224_v25 = vld [vmem:[%s563_s28 + $0x48] sm:$0xff]  ;;  %v225_v26 = vld [vmem:[%s563_s28 + $0x50] sm:$0xff]  ;;  %v226_v31 = vld [vmem:[%s563_s28 + $0x58] sm:$0xff] }
  0x17   : > { %v264_v20 = vadd.f32 %v568_v1, %v242_v11  ;;  %v265_v21 = vadd.f32 %v568_v1, %v243_v12  ;;  %v266_v22 = vadd.f32 %v568_v1, %v244_v13  ;;  %v246_v23 = vmul.f32 %v558_v0, %v222_v15  ;;  %v227_v32 = vld [vmem:[%s563_s28 + $0x60] sm:$0xff]  ;;  %v228_v33 = vld [vmem:[%s563_s28 + $0x68] sm:$0xff]  ;;  %v229_v38 = vld [vmem:[%s563_s28 + $0x70] sm:$0xff] }
  0x18   : > { %v277_v27 = vmax.f32 %v261_v16, 0.0  ;;  %v278_v28 = vmax.f32 %v262_v17, 0.0  ;;  %v279_v29 = vmax.f32 %v263_v18, 0.0  ;;  %v267_v30 = vadd.f32 %v568_v1, %v245_v19  ;;  %v230_v43 = vld [vmem:[%s563_s28 + $0x78] sm:$0xff] }
  0x19   : > { %v280_v34 = vmax.f32 %v264_v20, 0.0  ;;  %v281_v35 = vmax.f32 %v265_v21, 0.0  ;;  %v282_v36 = vmax.f32 %v266_v22, 0.0  ;;  %v268_v37 = vadd.f32 %v568_v1, %v246_v23 }
  0x1a   : > { %293 = vst [vmem:[%s591_s6] sm:$0xff] %v277_v27  ;;  %294 = vst [vmem:[%s591_s6 + $0x8] sm:$0xff] %v278_v28  ;;  %v283_v39 = vmax.f32 %v267_v30, 0.0  ;;  %v247_v40 = vmul.f32 %v558_v0, %v223_v24  ;;  %v248_v41 = vmul.f32 %v558_v0, %v224_v25  ;;  %v249_v42 = vmul.f32 %v558_v0, %v225_v26 }
  0x1b   : > { %295 = vst [vmem:[%s591_s6 + $0x10] sm:$0xff] %v279_v29  ;;  %296 = vst [vmem:[%s591_s6 + $0x18] sm:$0xff] %v280_v34  ;;  %v284_v44 = vmax.f32 %v268_v37, 0.0  ;;  %v250_v45 = vmul.f32 %v558_v0, %v226_v31  ;;  %v251_v46 = vmul.f32 %v558_v0, %v227_v32  ;;  %v252_v47 = vmul.f32 %v558_v0, %v228_v33 }
  0x1c   : > { %297 = vst [vmem:[%s591_s6 + $0x20] sm:$0xff] %v281_v35  ;;  %298 = vst [vmem:[%s591_s6 + $0x28] sm:$0xff] %v282_v36  ;;  %v269_v48 = vadd.f32 %v568_v1, %v247_v40  ;;  %v270_v49 = vadd.f32 %v568_v1, %v248_v41  ;;  %v271_v50 = vadd.f32 %v568_v1, %v249_v42 }
  0x1d   : > { %299 = vst [vmem:[%s591_s6 + $0x30] sm:$0xff] %v283_v39  ;;  %v253_v51 = vmul.f32 %v558_v0, %v229_v38  ;;  %300 = vst [vmem:[%s591_s6 + $0x38] sm:$0xff] %v284_v44  ;;  %v272_v52 = vadd.f32 %v568_v1, %v250_v45  ;;  %v273_v53 = vadd.f32 %v568_v1, %v251_v46 }
  0x1e   : > { %v274_v54 = vadd.f32 %v568_v1, %v252_v47  ;;  %v254_v55 = vmul.f32 %v558_v0, %v230_v43  ;;  %v285_v56 = vmax.f32 %v269_v48, 0.0  ;;  %v286_v57 = vmax.f32 %v270_v49, 0.0 }
  0x1f   : > { %v287_v58 = vmax.f32 %v271_v50, 0.0  ;;  %v275_v59 = vadd.f32 %v568_v1, %v253_v51  ;;  %v288_v60 = vmax.f32 %v272_v52, 0.0  ;;  %v289_v61 = vmax.f32 %v273_v53, 0.0 }
  0x20   : > { %v290_v62 = vmax.f32 %v274_v54, 0.0  ;;  %v276_v63 = vadd.f32 %v568_v1, %v254_v55  ;;  %301 = vst [vmem:[%s591_s6 + $0x40] sm:$0xff] %v285_v56  ;;  %302 = vst [vmem:[%s591_s6 + $0x48] sm:$0xff] %v286_v57 }
  0x21   : > { %303 = vst [vmem:[%s591_s6 + $0x50] sm:$0xff] %v287_v58  ;;  %v291_v2 = vmax.f32 %v275_v59, 0.0  ;;  %304 = vst [vmem:[%s591_s6 + $0x58] sm:$0xff] %v288_v60 }
  0x22   : > { %305 = vst [vmem:[%s591_s6 + $0x60] sm:$0xff] %v289_v61  ;;  %306 = vst [vmem:[%s591_s6 + $0x68] sm:$0xff] %v290_v62  ;;  %v292_v0 = vmax.f32 %v276_v63, 0.0 }
  0x23   : > { %307 = vst [vmem:[%s591_s6 + $0x70] sm:$0xff] %v291_v2 }
  0x24   : > { %308 = vst [vmem:[%s591_s6 + $0x78] sm:$0xff] %v292_v0 }
  0x25 PF: > { %s13_s16 = sadd.s32 1, %s503_s16   ;;  %s658_s12 = smov %s495_s14 }
  0x26   : > { %p10_p7 = scmp.ge.s32.totalorder %s13_s16, 6   ;;  %s659_s13 = smov %s499_s15 }
  0x27   : > { %s660_s14 = smov %s663_s17  ;;  %s661_s15 = smov %s667_s18 }
  0x28   :  { %12 = sbr.rel (!%p10_p7) target bundleno = 3 (0x3), region = 62 }

// kernel: block_forward.2
= control target key start
LH: loop header
LB: loop body
LE: loop exit
PB: predicated region body
PF: predicated region fallthrough
CT: control target
= control target key end

     0   :  { %s1812_s12 = smov 0   ;;  %s1814_s13 = smov 0   ;;  %s2330_s0 = inlined_call_operand.vmem [shape: f32[2,2,10,18,8], index: 0, kind: input, shape index: {}]   ;;  %s2331_s1 = inlined_call_operand.vmem [shape: f32[72,128], index: 1, kind: input, shape index: {}]   ;;  %s2332_s2 = inlined_call_operand.vmem [shape: f32[2,16,16,128], index: 2, kind: output, shape index: {0}]   ;;  %s2333_s3 = inlined_call_operand.vmem [shape: f32[2,2,2,128], index: 3, kind: output, shape index: {1}]  }
   0x1   :  { %s1816_s14 = smov 0   ;;  %s1818_s15 = smov 0  }
   0x2   :  { %s1820_s16 = smov 0  }
   0x3 LB: > { %s23_s17 = sadd.s32 1, %s1774_s14  ;;  %s26_s18 = sadd.s32 1, %s1778_s15  ;;  %s1782_s16 = sphi %s1820_s16, %s14_s16   ;;  %s1778_s15 = sphi %s1818_s15, %s2337_s15   ;;  %s1774_s14 = sphi %s1816_s14, %s2336_s14   ;;  %s1770_s13 = sphi %s1814_s13, %s2335_s13   ;;  %s1766_s12 = sphi %s1812_s12, %s2334_s12  }
   0x4   : > { %p24_p0 = scmp.ge.s32.totalorder %s23_s17, 2  ;;  %p1487_p1 = scmp.ge.s32.totalorder %s1782_s16, 1 }
   0x5   : > { %p162_p2 = scmp.lt.s32.totalorder %s1782_s16, 5 }
   0x6   : > { %s2339_s17 = smov (%p24_p0, %s23_s17), 0  ;;  %s2341_s18 = smov (!%p24_p0, %s26_s18), %s1778_s15 }
   0x7   : > { %p163_p3 = pnand %p1487_p1, %p162_p2  ;;  %p28_p4 = scmp.ge.s32.totalorder %s2341_s18, 2 }
   0x8   : > { %p203_p5 = scmp.lt.s32.totalorder (!%p163_p3), %s1770_s13, 1  ;;  %p205_p6 = scmp.lt.s32.totalorder (!%p163_p3), %s1766_s12, 1 }
   0x9   : > { %s2343_s18 = smov (%p28_p4, %s2341_s18), 0  ;;  %166 = sbr.rel (%p163_p3) target bundleno = 614 (0x266), region = 28 }
   0xa   : > { %s1784_s27 = smov (!%p163_p3), 16   ;;  %s1785_s28 = smov (!%p163_p3), 8  }
   0xb   : > { %s1786_s29 = smov (!%p163_p3), 24   ;;  %s1787_s30 = smov (!%p163_p3), 32  }
   0xc   : > { %s1788_s4 = smov (!%p163_p3), 40   ;;  %s1789_s5 = smov (!%p163_p3), 48  }
   0xd   : > { %s1791_s9 = smov (!%p163_p3), 64  }
   0xe   : > { %s2345_s13 = smov (!%p203_p5, %s1770_s13), 1  ;;  %vm247_vm0 = vcmask 64512   ;;  %v1066_v21 = vld [vmem:[%s2331_s1 + $0x40] sm:$0xff]  ;;  %v1065_v22 = vld [vmem:[%s2331_s1 + $0x38] sm:$0xff]  ;;  %v1064_v23 = vld [vmem:[%s2331_s1 + $0x30] sm:$0xff]  ;;  %vm344_vm1 = vcmask 130112  }
   0xf   : > { %s1848_s19 = scalar_select %p205_p6, %s1766_s12, 1  ;;  %1634 = vmatprep.subr.mxu0 %v1066_v21  ;;  %1676 = vmatprep.subr.mxu1 %v1066_v21  ;;  %v1063_v25 = vld [vmem:[%s2331_s1 + $0x28] sm:$0xff]  ;;  %v1062_v27 = vld [vmem:[%s2331_s1 + $0x20] sm:$0xff]  ;;  %v1061_v28 = vld [vmem:[%s2331_s1 + $0x18] sm:$0xff]  ;;  %vm441_vm2 = vcmask 195712   ;;  %vm539_vm3 = vcmask 261312  }
  0x10   : > { %s1695_s20 = smul.u32 60, %s2345_s13  ;;  %1635 = vmatpush3.msra.mxu0 %v1066_v21  ;;  %1685 = vmatpush3.msra.mxu1 %v1066_v21  ;;  %v1060_v31 = vld [vmem:[%s2331_s1 + $0x10] sm:$0xff]  ;;  %v1059_v32 = vld [vmem:[%s2331_s1 + $0x8] sm:$0xff]  ;;  %v1058_v33 = vld [vmem:[%s2331_s1] sm:$0xff]  ;;  %vm636_vm4 = vcmask 326912   ;;  %vm733_vm5 = vcmask 392512  }
  0x11   : > { %s1694_s21 = smul.u32 30, %s1848_s19  ;;  %1636 = vmatprep.subr.mxu0 %v1065_v22  ;;  %1677 = vmatprep.subr.mxu1 %v1065_v22  ;;  %vm831_vm6 = vcmask 458112   ;;  %vm928_vm7 = vcmask 523712   ;;  %vm1025_vm8 = vcmask 589312   ;;  %vm1067_vm9 = vcmask 588800  }
  0x12   : > { %1637 = vmatpush3.msra.mxu0 %v1065_v22  ;;  %1686 = vmatpush3.msra.mxu1 %v1065_v22 }
  0x13   : > { %s209_s22 = sadd.s32 %s1695_s20, %s1694_s21  ;;  %1638 = vmatprep.subr.mxu0 %v1064_v23  ;;  %1678 = vmatprep.subr.mxu1 %v1064_v23 }
  0x14   : > { %s1488_s23 = sshll.u32 %s209_s22, 3  ;;  %1639 = vmatpush3.msra.mxu0 %v1064_v23  ;;  %1687 = vmatpush3.msra.mxu1 %v1064_v23  ;;  %s1790_s22 = smov 56  }
  0x15   : > { %s1855_s26 = scalar_lea.vmem %s2330_s0, %s1488_s23  ;;  %1640 = vmatprep.subr.mxu0 %v1063_v25  ;;  %1679 = vmatprep.subr.mxu1 %v1063_v25 }
  0x16   : > { %v361_v0 = vld [vmem:[%s1855_s26 + $0x2] sm:$0xff]  ;;  %v362_v3 = vld [vmem:[%s1855_s26 + $0xa] sm:$0xff]  ;;  %v1495_v5 = vld [vmem:[%s1855_s26 + $0x18] sm:$0xff]  ;;  %1641 = vmatpush3.msra.mxu0 %v1063_v25  ;;  %1688 = vmatpush3.msra.mxu1 %v1063_v25 }
  0x17   : > { %v264_v1 = vld [vmem:[%s1855_s26 + $0x1] sm:$0xff]  ;;  %393 = vrot.lane.b32.xlu1 %v361_v0, %s1784_s27  ;;  %v265_v4 = vld [vmem:[%s1855_s26 + $0x9] sm:$0xff]  ;;  %250 = vst.msk [vmem:[#allocation2 + $0x10] sm:$0xff] %vm247_vm0, %v1495_v5  ;;  %v1869_v7 = vld [vmem:[%s1855_s26 + $0x38] sm:$0xff]  ;;  %1642 = vmatprep.subr.mxu0 %v1062_v27 }
  0x18   : > { %296 = vrot.lane.b32.xlu0 %v264_v1, %s1785_s28  ;;  %v1496_v2 = vld [vmem:[%s1855_s26 + $0x20] sm:$0xff]  ;;  %v1543_v6 = vld [vmem:[%s1855_s26 + $0x30] sm:$0xff]  ;;  %253 = vst.msk [vmem:[#allocation2 + $0x28] sm:$0xff] %vm247_vm0, %v1869_v7  ;;  %v1877_v8 = vld [vmem:[%s1855_s26 + $0x48] sm:$0xff]  ;;  %1680 = vmatprep.subr.mxu1 %v1062_v27 }
  0x19   : > { %251 = vst.msk [vmem:[#allocation2 + $0x18] sm:$0xff] %vm247_vm0, %v1496_v2  ;;  %252 = vst.msk [vmem:[#allocation2 + $0x20] sm:$0xff] %vm247_vm0, %v1543_v6  ;;  %v1880_v9 = vld [vmem:[%s1855_s26 + $0x50] sm:$0xff]  ;;  %v1887_v10 = vld [vmem:[%s1855_s26 + $0x60] sm:$0xff]  ;;  %1643 = vmatpush3.msra.mxu0 %v1062_v27  ;;  %1689 = vmatpush3.msra.mxu1 %v1062_v27 }
  0x1a   : > { %254 = vst.msk [vmem:[#allocation2 + $0x30] sm:$0xff] %vm247_vm0, %v1877_v8  ;;  %255 = vst.msk [vmem:[#allocation2 + $0x38] sm:$0xff] %vm247_vm0, %v1880_v9  ;;  %v1890_v11 = vld [vmem:[%s1855_s26 + $0x68] sm:$0xff]  ;;  %v266_v12 = vld [vmem:[%s1855_s26 + $0x19] sm:$0xff]  ;;  %1644 = vmatprep.subr.mxu0 %v1061_v28  ;;  %1681 = vmatprep.subr.mxu1 %v1061_v28 }
  0x1b   : > { %395 = vrot.lane.b32.xlu1 %v362_v3, %s1784_s27  ;;  %256 = vst.msk [vmem:[#allocation2 + $0x40] sm:$0xff] %vm247_vm0, %v1887_v10  ;;  %257 = vst.msk [vmem:[#allocation2 + $0x48] sm:$0xff] %vm247_vm0, %v1890_v11  ;;  %v231_v13 = vld [vmem:[%s1855_s26] sm:$0xff]  ;;  %v232_v14 = vld [vmem:[%s1855_s26 + $0x8] sm:$0xff]  ;;  %1645 = vmatpush3.msra.mxu0 %v1061_v28 }
  0x1c   : > { %298 = vrot.lane.b32.xlu0 %v265_v4, %s1785_s28  ;;  %248 = vst.msk [vmem:[#allocation2] sm:$0xff] %vm247_vm0, %v231_v13  ;;  %249 = vst.msk [vmem:[#allocation2 + $0x8] sm:$0xff] %vm247_vm0, %v232_v14  ;;  %v1904_v15 = vld [vmem:[%s1855_s26 + $0x78] sm:$0xff]  ;;  %v1907_v16 = vld [vmem:[%s1855_s26 + $0x80] sm:$0xff]  ;;  %1690 = vmatpush3.msra.mxu1 %v1061_v28 }
  0x1d   : > { %258 = vst.msk [vmem:[#allocation2 + $0x50] sm:$0xff] %vm247_vm0, %v1904_v15  ;;  %259 = vst.msk [vmem:[#allocation2 + $0x58] sm:$0xff] %vm247_vm0, %v1907_v16  ;;  %v1527_v17 = vld [vmem:[%s1855_s26 + $0x1a] sm:$0xff]  ;;  %v1528_v19 = vld [vmem:[%s1855_s26 + $0x22] sm:$0xff]  ;;  %1646 = vmatprep.subr.mxu0 %v1060_v31  ;;  %1682 = vmatprep.subr.mxu1 %v1060_v31 }
  0x1e   : > { %v1512_v18 = vld [vmem:[%s1855_s26 + $0x21] sm:$0xff]  ;;  %v1923_v20 = vld [vmem:[%s1855_s26 + $0x90] sm:$0xff]  ;;  %v1945_v26 = vld [vmem:[%s1855_s26 + $0x98] sm:$0xff]  ;;  %1647 = vmatpush3.msra.mxu0 %v1060_v31  ;;  %1691 = vmatpush3.msra.mxu1 %v1060_v31 }
  0x1f   : > { %493 = vrot.lane.b32.xlu1 %v1496_v2, %s1786_s29  ;;  %260 = vst.msk [vmem:[#allocation2 + $0x60] sm:$0xff] %vm247_vm0, %v1923_v20  ;;  %v1559_v24 = vld [vmem:[%s1855_s26 + $0x31] sm:$0xff]  ;;  %261 = vst.msk [vmem:[#allocation2 + $0x68] sm:$0xff] %vm247_vm0, %v1945_v26  ;;  %v1560_v30 = vld [vmem:[%s1855_s26 + $0x39] sm:$0xff]  ;;  %1648 = vmatprep.subr.mxu0 %v1059_v32 }
  0x20   : > { %491 = vrot.lane.b32.xlu0 %v1495_v5, %s1786_s29  ;;  %v1575_v29 = vld [vmem:[%s1855_s26 + $0x32] sm:$0xff]  ;;  %1683 = vmatprep.subr.mxu1 %v1059_v32  ;;  %v1576_v34 = vld [vmem:[%s1855_s26 + $0x3a] sm:$0xff]  ;;  %v1982_v35 = vld [vmem:[%s1855_s26 + $0xa8] sm:$0xff] }
  0x21   : > { %1649 = vmatpush3.msra.mxu0 %v1059_v32  ;;  %1692 = vmatpush3.msra.mxu1 %v1059_v32  ;;  %262 = vst.msk [vmem:[#allocation2 + $0x70] sm:$0xff] %vm247_vm0, %v1982_v35  ;;  %v1561_v36 = vld [vmem:[%s1855_s26 + $0x49] sm:$0xff]  ;;  %v1562_v39 = vld [vmem:[%s1855_s26 + $0x51] sm:$0xff]  ;;  %v1563_v41 = vld [vmem:[%s1855_s26 + $0x61] sm:$0xff] }
  0x22   : > { %1650 = vmatprep.subr.mxu0 %v1058_v33  ;;  %1684 = vmatprep.subr.mxu1 %v1058_v33  ;;  %v1994_v37 = vld [vmem:[%s1855_s26 + $0xb0] sm:$0xff]  ;;  %v1579_v42 = vld [vmem:[%s1855_s26 + $0x62] sm:$0xff]  ;;  %v1565_v51 = vld [vmem:[%s1855_s26 + $0x79] sm:$0xff] }
  0x23   : > { %300 = vrot.lane.b32.xlu1 %v266_v12, %s1785_s28  ;;  %1651 = vmatpush3.msra.mxu0 %v1058_v33  ;;  %263 = vst.msk [vmem:[#allocation2 + $0x78] sm:$0xff] %vm247_vm0, %v1994_v37  ;;  %v1577_v38 = vld [vmem:[%s1855_s26 + $0x4a] sm:$0xff]  ;;  %v1578_v40 = vld [vmem:[%s1855_s26 + $0x52] sm:$0xff]  ;;  %v1581_v56 = vld [vmem:[%s1855_s26 + $0x7a] sm:$0xff] }
  0x24   : > { %588 = vrot.lane.b32.xlu0 %v266_v12, %s1787_s30  ;;  %1693 = vmatpush3.msra.mxu1 %v1058_v33  ;;  %v1564_v43 = vld [vmem:[%s1855_s26 + $0x69] sm:$0xff]  ;;  %v1566_v57 = vld [vmem:[%s1855_s26 + $0x81] sm:$0xff]  ;;  %v1583_v13 = vld [vmem:[%s1855_s26 + $0x92] sm:$0xff] }
  0x25   : > { %v1580_v44 = vld [vmem:[%s1855_s26 + $0x6a] sm:$0xff]  ;;  %v1582_v62 = vld [vmem:[%s1855_s26 + $0x82] sm:$0xff]  ;;  %v1568_v14 = vld [vmem:[%s1855_s26 + $0x99] sm:$0xff] }
  0x27   : > { %685 = vrot.lane.b32.xlu1 %v1527_v17, %s1788_s4 }
  0x28   : > { %590 = vrot.lane.b32.xlu0 %v1512_v18, %s1787_s30 }
  0x2b   : > { %397 = vrot.lane.b32.xlu1 %v1527_v17, %s1784_s27 }
  0x2c   : > { %302 = vrot.lane.b32.xlu0 %v1512_v18, %s1785_s28 }
  0x2f   : > { %783 = vrot.lane.b32.xlu1 %v1543_v6, %s1789_s5 }
  0x30   : > { %687 = vrot.lane.b32.xlu0 %v1528_v19, %s1788_s4 }
  0x33   : > { %495 = vrot.lane.b32.xlu1 %v1543_v6, %s1786_s29 }
  0x34   : > { %399 = vrot.lane.b32.xlu0 %v1528_v19, %s1784_s27 }
  0x37   : > { %880 = vrot.lane.b32.xlu1 %v1559_v24, %s1790_s22 }
  0x38   : > { %785 = vrot.lane.b32.xlu0 %v1869_v7, %s1789_s5 }
  0x3b   : > { %592 = vrot.lane.b32.xlu1 %v1559_v24, %s1787_s30 }
  0x3c   : > { %497 = vrot.lane.b32.xlu0 %v1869_v7, %s1786_s29  ;;  %v1567_v7 = vld [vmem:[%s1855_s26 + $0x91] sm:$0xff] }
  0x3f   : > { %977 = vrot.lane.b32.xlu1 %v1575_v29, %s1791_s9 }
  0x40   : > { %882 = vrot.lane.b32.xlu0 %v1560_v30, %s1790_s22 }
  0x43   : > { %594 = vrot.lane.b32.xlu1 %v1560_v30, %s1787_s30 }
  0x44   : > { %304 = vrot.lane.b32.xlu0 %v1559_v24, %s1785_s28 }
  0x47   : > { %979 = vrot.lane.b32.xlu1 %v1576_v34, %s1791_s9 }
  0x48   : > { %689 = vrot.lane.b32.xlu0 %v1575_v29, %s1788_s4 }
  0x4b   : > { %401 = vrot.lane.b32.xlu1 %v1575_v29, %s1784_s27  ;;  %v1569_v29 = vld [vmem:[%s1855_s26 + $0xa9] sm:$0xff] }
  0x4c   : > { %306 = vrot.lane.b32.xlu0 %v1560_v30, %s1785_s28 }
  0x4f   : > { %787 = vrot.lane.b32.xlu1 %v1877_v8, %s1789_s5 }
  0x50   : > { %691 = vrot.lane.b32.xlu0 %v1576_v34, %s1788_s4 }
  0x53   : > { %499 = vrot.lane.b32.xlu1 %v1877_v8, %s1786_s29 }
  0x54   : > { %403 = vrot.lane.b32.xlu0 %v1576_v34, %s1784_s27 }
  0x57   : > { %884 = vrot.lane.b32.xlu1 %v1561_v36, %s1790_s22 }
  0x58   : > { %789 = vrot.lane.b32.xlu0 %v1880_v9, %s1789_s5 }
  0x5b   : > { %596 = vrot.lane.b32.xlu1 %v1561_v36, %s1787_s30 }
  0x5c   : > { %501 = vrot.lane.b32.xlu0 %v1880_v9, %s1786_s29 }
  0x5f   : > { %981 = vrot.lane.b32.xlu1 %v1577_v38, %s1791_s9 }
  0x60   : > { %886 = vrot.lane.b32.xlu0 %v1562_v39, %s1790_s22 }
  0x63   : > { %598 = vrot.lane.b32.xlu1 %v1562_v39, %s1787_s30 }
  0x64   : > { %308 = vrot.lane.b32.xlu0 %v1561_v36, %s1785_s28  ;;  %v1570_v36 = vld [vmem:[%s1855_s26 + $0xb1] sm:$0xff] }
  0x67   : > { %983 = vrot.lane.b32.xlu1 %v1578_v40, %s1791_s9 }
  0x68   : > { %693 = vrot.lane.b32.xlu0 %v1577_v38, %s1788_s4 }
  0x6b   : > { %405 = vrot.lane.b32.xlu1 %v1577_v38, %s1784_s27 }
  0x6c   : > { %310 = vrot.lane.b32.xlu0 %v1562_v39, %s1785_s28 }
  0x6f   : > { %791 = vrot.lane.b32.xlu1 %v1887_v10, %s1789_s5 }
  0x70   : > { %695 = vrot.lane.b32.xlu0 %v1578_v40, %s1788_s4 }
  0x73   : > { %503 = vrot.lane.b32.xlu1 %v1887_v10, %s1786_s29 }
  0x74   : > { %407 = vrot.lane.b32.xlu0 %v1578_v40, %s1784_s27 }
  0x77   : > { %888 = vrot.lane.b32.xlu1 %v1563_v41, %s1790_s22 }
  0x78   : > { %793 = vrot.lane.b32.xlu0 %v1890_v11, %s1789_s5 }
  0x7b   : > { %600 = vrot.lane.b32.xlu1 %v1563_v41, %s1787_s30 }
  0x7c   : > { %505 = vrot.lane.b32.xlu0 %v1890_v11, %s1786_s29 }
  0x7f   : > { %985 = vrot.lane.b32.xlu1 %v1579_v42, %s1791_s9 }
  0x80   : > { %890 = vrot.lane.b32.xlu0 %v1564_v43, %s1790_s22 }
  0x83   : > { %602 = vrot.lane.b32.xlu1 %v1564_v43, %s1787_s30 }
  0x84   : > { %312 = vrot.lane.b32.xlu0 %v1563_v41, %s1785_s28 }
  0x87   : > { %987 = vrot.lane.b32.xlu1 %v1580_v44, %s1791_s9 }
  0x88   : > { %697 = vrot.lane.b32.xlu0 %v1579_v42, %s1788_s4 }
  0x89   : > { %v394_v45 = vpop.permute.xlu1 %393 }
  0x8a   : > { %v297_v46 = vpop.permute.xlu0 %296 }
  0x8b   : > { %345 = vst.msk [vmem:[#allocation2] sm:$0xff] %vm344_vm1, %v297_v46  ;;  %409 = vrot.lane.b32.xlu1 %v1579_v42, %s1784_s27 }
  0x8c   : > { %314 = vrot.lane.b32.xlu0 %v1564_v43, %s1785_s28  ;;  %442 = vst.msk [vmem:[#allocation2] sm:$0xff] %vm441_vm2, %v394_v45 }
  0x8d   : > { %v396_v47 = vpop.permute.xlu1 %395 }
  0x8e   : > { %v299_v48 = vpop.permute.xlu0 %298 }
  0x8f   : > { %346 = vst.msk [vmem:[#allocation2 + $0x8] sm:$0xff] %vm344_vm1, %v299_v48  ;;  %795 = vrot.lane.b32.xlu1 %v1904_v15, %s1789_s5 }
  0x90   : > { %699 = vrot.lane.b32.xlu0 %v1580_v44, %s1788_s4  ;;  %443 = vst.msk [vmem:[#allocation2 + $0x8] sm:$0xff] %vm441_vm2, %v396_v47  ;;  %v1555_v47 = vld [vmem:[%s1855_s26 + $0xc0] sm:$0xff] }
  0x91   : > { %v494_v49 = vpop.permute.xlu1 %493 }
  0x92   : > { %v492_v50 = vpop.permute.xlu0 %491  ;;  %541 = vst.msk [vmem:[#allocation2 + $0x8] sm:$0xff] %vm539_vm3, %v494_v49 }
  0x93   : > { %540 = vst.msk [vmem:[#allocation2] sm:$0xff] %vm539_vm3, %v492_v50  ;;  %507 = vrot.lane.b32.xlu1 %v1904_v15, %s1786_s29 }
  0x94   : > { %411 = vrot.lane.b32.xlu0 %v1580_v44, %s1784_s27 }
  0x95   : > { %v301_v52 = vpop.permute.xlu1 %300 }
  0x96   : > { %v589_v53 = vpop.permute.xlu0 %588  ;;  %347 = vst.msk [vmem:[#allocation2 + $0x10] sm:$0xff] %vm344_vm1, %v301_v52  ;;  %v1556_v52 = vld [vmem:[%s1855_s26 + $0xc8] sm:$0xff] }
  0x97   : > { %637 = vst.msk [vmem:[#allocation2] sm:$0xff] %vm636_vm4, %v589_v53  ;;  %892 = vrot.lane.b32.xlu1 %v1565_v51, %s1790_s22  ;;  %v1571_v53 = vld [vmem:[%s1855_s26 + $0xc1] sm:$0xff] }
  0x98   : > { %797 = vrot.lane.b32.xlu0 %v1907_v16, %s1789_s5 }
  0x99   : > { %v686_v54 = vpop.permute.xlu1 %685 }
  0x9a   : > { %v591_v55 = vpop.permute.xlu0 %590  ;;  %734 = vst.msk [vmem:[#allocation2] sm:$0xff] %vm733_vm5, %v686_v54 }
  0x9b   : > { %638 = vst.msk [vmem:[#allocation2 + $0x8] sm:$0xff] %vm636_vm4, %v591_v55  ;;  %604 = vrot.lane.b32.xlu1 %v1565_v51, %s1787_s30 }
  0x9c   : > { %509 = vrot.lane.b32.xlu0 %v1907_v16, %s1786_s29 }
  0x9d   : > { %v398_v58 = vpop.permute.xlu1 %397 }
  0x9e   : > { %v303_v59 = vpop.permute.xlu0 %302  ;;  %444 = vst.msk [vmem:[#allocation2 + $0x10] sm:$0xff] %vm441_vm2, %v398_v58 }
  0x9f   : > { %348 = vst.msk [vmem:[#allocation2 + $0x18] sm:$0xff] %vm344_vm1, %v303_v59  ;;  %989 = vrot.lane.b32.xlu1 %v1581_v56, %s1791_s9  ;;  %v1572_v59 = vld [vmem:[%s1855_s26 + $0xc9] sm:$0xff] }
  0xa0   : > { %894 = vrot.lane.b32.xlu0 %v1566_v57, %s1790_s22 }
  0xa1   : > { %v784_v60 = vpop.permute.xlu1 %783 }
  0xa2   : > { %v688_v61 = vpop.permute.xlu0 %687  ;;  %832 = vst.msk [vmem:[#allocation2] sm:$0xff] %vm831_vm6, %v784_v60  ;;  %v1587_v60 = vld [vmem:[%s1855_s26 + $0xc2] sm:$0xff] }
  0xa3   : > { %735 = vst.msk [vmem:[#allocation2 + $0x8] sm:$0xff] %vm733_vm5, %v688_v61  ;;  %606 = vrot.lane.b32.xlu1 %v1566_v57, %s1787_s30 }
  0xa4   : > { %316 = vrot.lane.b32.xlu0 %v1565_v51, %s1785_s28 }
  0xa5   : > { %v496_v63 = vpop.permute.xlu1 %495 }
  0xa6   : > { %v400_v0 = vpop.permute.xlu0 %399  ;;  %542 = vst.msk [vmem:[#allocation2 + $0x10] sm:$0xff] %vm539_vm3, %v496_v63 }
  0xa7   : > { %445 = vst.msk [vmem:[#allocation2 + $0x18] sm:$0xff] %vm441_vm2, %v400_v0  ;;  %991 = vrot.lane.b32.xlu1 %v1582_v62, %s1791_s9 }
  0xa8   : > { %701 = vrot.lane.b32.xlu0 %v1581_v56, %s1788_s4 }
  0xa9   : > { %v881_v1 = vpop.permute.xlu1 %880 }
  0xaa   : > { %v786_v2 = vpop.permute.xlu0 %785  ;;  %929 = vst.msk [vmem:[#allocation2] sm:$0xff] %vm928_vm7, %v881_v1 }
  0xab   : > { %833 = vst.msk [vmem:[#allocation2 + $0x8] sm:$0xff] %vm831_vm6, %v786_v2  ;;  %413 = vrot.lane.b32.xlu1 %v1581_v56, %s1784_s27  ;;  %v1588_v2 = vld [vmem:[%s1855_s26 + $0xca] sm:$0xff] }
  0xac   : > { %318 = vrot.lane.b32.xlu0 %v1566_v57, %s1785_s28 }
  0xad   : > { %v593_v3 = vpop.permute.xlu1 %592 }
  0xae   : > { %v498_v4 = vpop.permute.xlu0 %497  ;;  %639 = vst.msk [vmem:[#allocation2 + $0x10] sm:$0xff] %vm636_vm4, %v593_v3 }
  0xaf   : > { %543 = vst.msk [vmem:[#allocation2 + $0x18] sm:$0xff] %vm539_vm3, %v498_v4  ;;  %799 = vrot.lane.b32.xlu1 %v1923_v20, %s1789_s5 }
  0xb0   : > { %703 = vrot.lane.b32.xlu0 %v1582_v62, %s1788_s4 }
  0xb1   : > { %v978_v5 = vpop.permute.xlu1 %977 }
  0xb2   : > { %v883_v6 = vpop.permute.xlu0 %882  ;;  %1026 = vst.msk [vmem:[#allocation2] sm:$0xff] %vm1025_vm8, %v978_v5  ;;  %v1557_v5 = vld [vmem:[%s1855_s26 + $0xd8] sm:$0xff] }
  0xb3   : > { %930 = vst.msk [vmem:[#allocation2 + $0x8] sm:$0xff] %vm928_vm7, %v883_v6  ;;  %511 = vrot.lane.b32.xlu1 %v1923_v20, %s1786_s29  ;;  %v1584_v20 = vld [vmem:[%s1855_s26 + $0x9a] sm:$0xff] }
  0xb4   : > { %415 = vrot.lane.b32.xlu0 %v1582_v62, %s1784_s27  ;;  %v1558_v6 = vld [vmem:[%s1855_s26 + $0xe0] sm:$0xff] }
  0xb5   : > { %v595_v8 = vpop.permute.xlu1 %594 }
  0xb6   : > { %v305_v9 = vpop.permute.xlu0 %304  ;;  %640 = vst.msk [vmem:[#allocation2 + $0x18] sm:$0xff] %vm636_vm4, %v595_v8 }
  0xb7   : > { %349 = vst.msk [vmem:[#allocation2 + $0x20] sm:$0xff] %vm344_vm1, %v305_v9  ;;  %896 = vrot.lane.b32.xlu1 %v1567_v7, %s1790_s22  ;;  %v1573_v9 = vld [vmem:[%s1855_s26 + $0xd9] sm:$0xff] }
  0xb8   : > { %801 = vrot.lane.b32.xlu0 %v1945_v26, %s1789_s5 }
  0xb9   : > { %v980_v10 = vpop.permute.xlu1 %979  ;;  %v1042_v12 = vld [vmem:[#allocation2] sm:$0xff] }
  0xba   : > { %v690_v11 = vpop.permute.xlu0 %689  ;;  %1027 = vst.msk [vmem:[#allocation2 + $0x8] sm:$0xff] %vm1025_vm8, %v980_v10  ;;  %1652 = vmatprep.mubr.msk.f32.mxu0 %vm1067_vm9, %v1042_v12  ;;  %v1574_v10 = vld [vmem:[%s1855_s26 + $0xe1] sm:$0xff] }
  0xbb   : > { %736 = vst.msk [vmem:[#allocation2 + $0x10] sm:$0xff] %vm733_vm5, %v690_v11  ;;  %608 = vrot.lane.b32.xlu1 %v1567_v7, %s1787_s30 }
  0xbc   : > { %513 = vrot.lane.b32.xlu0 %v1945_v26, %s1786_s29 }
  0xbd   : > { %v402_v15 = vpop.permute.xlu1 %401 }
  0xbe   : > { %v307_v16 = vpop.permute.xlu0 %306  ;;  %446 = vst.msk [vmem:[#allocation2 + $0x20] sm:$0xff] %vm441_vm2, %v402_v15 }
  0xbf   : > { %350 = vst.msk [vmem:[#allocation2 + $0x28] sm:$0xff] %vm344_vm1, %v307_v16  ;;  %993 = vrot.lane.b32.xlu1 %v1583_v13, %s1791_s9 }
  0xc0   : > { %898 = vrot.lane.b32.xlu0 %v1568_v14, %s1790_s22 }
  0xc1   : > { %v788_v17 = vpop.permute.xlu1 %787  ;;  %v1043_v19 = vld [vmem:[#allocation2 + $0x8] sm:$0xff] }
  0xc2   : > { %v692_v18 = vpop.permute.xlu0 %691  ;;  %834 = vst.msk [vmem:[#allocation2 + $0x10] sm:$0xff] %vm831_vm6, %v788_v17  ;;  %1653 = vmatmul.mubr.msk.f32.vlgmr.msra.gmra.mxu0 %vm1067_vm9, %v1043_v19 }
  0xc3   : > { %737 = vst.msk [vmem:[#allocation2 + $0x18] sm:$0xff] %vm733_vm5, %v692_v18  ;;  %610 = vrot.lane.b32.xlu1 %v1568_v14, %s1787_s30 }
  0xc4   : > { %320 = vrot.lane.b32.xlu0 %v1567_v7, %s1785_s28 }
  0xc5   : > { %v500_v21 = vpop.permute.xlu1 %499 }
  0xc6   : > { %v404_v22 = vpop.permute.xlu0 %403  ;;  %544 = vst.msk [vmem:[#allocation2 + $0x20] sm:$0xff] %vm539_vm3, %v500_v21 }
  0xc7   : > { %447 = vst.msk [vmem:[#allocation2 + $0x28] sm:$0xff] %vm441_vm2, %v404_v22  ;;  %995 = vrot.lane.b32.xlu1 %v1584_v20, %s1791_s9 }
  0xc8   : > { %705 = vrot.lane.b32.xlu0 %v1583_v13, %s1788_s4 }
  0xc9   : > { %v885_v23 = vpop.permute.xlu1 %884 }
  0xca   : > { %v790_v24 = vpop.permute.xlu0 %789  ;;  %931 = vst.msk [vmem:[#allocation2 + $0x10] sm:$0xff] %vm928_vm7, %v885_v23 }
  0xcb   : > { %835 = vst.msk [vmem:[#allocation2 + $0x18] sm:$0xff] %vm831_vm6, %v790_v24  ;;  %417 = vrot.lane.b32.xlu1 %v1583_v13, %s1784_s27  ;;  %v1589_v13 = vld [vmem:[%s1855_s26 + $0xda] sm:$0xff] }
  0xcc   : > { %322 = vrot.lane.b32.xlu0 %v1568_v14, %s1785_s28  ;;  %v1590_v14 = vld [vmem:[%s1855_s26 + $0xe2] sm:$0xff] }
  0xcd   : > { %v597_v25 = vpop.permute.xlu1 %596 }
  0xce   : > { %v502_v26 = vpop.permute.xlu0 %501  ;;  %641 = vst.msk [vmem:[#allocation2 + $0x20] sm:$0xff] %vm636_vm4, %v597_v25 }
  0xcf   : > { %545 = vst.msk [vmem:[#allocation2 + $0x28] sm:$0xff] %vm539_vm3, %v502_v26  ;;  %803 = vrot.lane.b32.xlu1 %v1982_v35, %s1789_s5 }
  0xd0   : > { %707 = vrot.lane.b32.xlu0 %v1584_v20, %s1788_s4 }
  0xd1   : > { %v982_v27 = vpop.permute.xlu1 %981 }
  0xd2   : > { %v887_v28 = vpop.permute.xlu0 %886  ;;  %1028 = vst.msk [vmem:[#allocation2 + $0x10] sm:$0xff] %vm1025_vm8, %v982_v27 }
  0xd3   : > { %932 = vst.msk [vmem:[#allocation2 + $0x18] sm:$0xff] %vm928_vm7, %v887_v28  ;;  %515 = vrot.lane.b32.xlu1 %v1982_v35, %s1786_s29  ;;  %v1585_v35 = vld [vmem:[%s1855_s26 + $0xaa] sm:$0xff] }
  0xd4   : > { %419 = vrot.lane.b32.xlu0 %v1584_v20, %s1784_s27 }
  0xd5   : > { %v599_v30 = vpop.permute.xlu1 %598 }
  0xd6   : > { %v309_v31 = vpop.permute.xlu0 %308  ;;  %642 = vst.msk [vmem:[#allocation2 + $0x28] sm:$0xff] %vm636_vm4, %v599_v30 }
  0xd7   : > { %351 = vst.msk [vmem:[#allocation2 + $0x30] sm:$0xff] %vm344_vm1, %v309_v31  ;;  %900 = vrot.lane.b32.xlu1 %v1569_v29, %s1790_s22 }
  0xd8   : > { %805 = vrot.lane.b32.xlu0 %v1994_v37, %s1789_s5 }
  0xd9   : > { %v984_v32 = vpop.permute.xlu1 %983  ;;  %v1044_v34 = vld [vmem:[#allocation2 + $0x10] sm:$0xff] }
  0xda   : > { %v694_v33 = vpop.permute.xlu0 %693  ;;  %1029 = vst.msk [vmem:[#allocation2 + $0x18] sm:$0xff] %vm1025_vm8, %v984_v32  ;;  %1655 = vmatprep.mubr.msk.f32.mxu0 %vm1067_vm9, %v1044_v34 }
  0xdb   : > { %738 = vst.msk [vmem:[#allocation2 + $0x20] sm:$0xff] %vm733_vm5, %v694_v33  ;;  %612 = vrot.lane.b32.xlu1 %v1569_v29, %s1787_s30 }
  0xdc   : > { %517 = vrot.lane.b32.xlu0 %v1994_v37, %s1786_s29  ;;  %v1586_v37 = vld [vmem:[%s1855_s26 + $0xb2] sm:$0xff]  ;;  %s1489_s26 = sshll.u32 %s1766_s12, 3 }
  0xdd   : > { %v406_v38 = vpop.permute.xlu1 %405  ;;  %p215_p7 = scmp.lt.s32.totalorder %s1489_s26, 15 }
  0xde   : > { %v311_v39 = vpop.permute.xlu0 %310  ;;  %448 = vst.msk [vmem:[#allocation2 + $0x30] sm:$0xff] %vm441_vm2, %v406_v38 }
  0xdf   : > { %352 = vst.msk [vmem:[#allocation2 + $0x38] sm:$0xff] %vm344_vm1, %v311_v39  ;;  %997 = vrot.lane.b32.xlu1 %v1585_v35, %s1791_s9  ;;  %s2347_s26 = smov (!%p215_p7, %s1489_s26), 15 }
  0xe0   : > { %902 = vrot.lane.b32.xlu0 %v1570_v36, %s1790_s22  ;;  %s1490_s12 = sshll.u32 %s2347_s26, 1 }
  0xe1   : > { %v792_v40 = vpop.permute.xlu1 %791  ;;  %v1045_v42 = vld [vmem:[#allocation2 + $0x18] sm:$0xff] }
  0xe2   : > { %v696_v41 = vpop.permute.xlu0 %695  ;;  %836 = vst.msk [vmem:[#allocation2 + $0x20] sm:$0xff] %vm831_vm6, %v792_v40  ;;  %1656 = vmatmul.mubr.msk.f32.gmra.mxu0 %vm1067_vm9, %v1045_v42 }
  0xe3   : > { %739 = vst.msk [vmem:[#allocation2 + $0x28] sm:$0xff] %vm733_vm5, %v696_v41  ;;  %614 = vrot.lane.b32.xlu1 %v1570_v36, %s1787_s30 }
  0xe4   : > { %324 = vrot.lane.b32.xlu0 %v1569_v29, %s1785_s28 }
  0xe5   : > { %v504_v43 = vpop.permute.xlu1 %503 }
  0xe6   : > { %v408_v44 = vpop.permute.xlu0 %407  ;;  %546 = vst.msk [vmem:[#allocation2 + $0x30] sm:$0xff] %vm539_vm3, %v504_v43 }
  0xe7   : > { %449 = vst.msk [vmem:[#allocation2 + $0x38] sm:$0xff] %vm441_vm2, %v408_v44  ;;  %999 = vrot.lane.b32.xlu1 %v1586_v37, %s1791_s9 }
  0xe8   : > { %709 = vrot.lane.b32.xlu0 %v1585_v35, %s1788_s4 }
  0xe9   : > { %v889_v45 = vpop.permute.xlu1 %888 }
  0xea   : > { %v794_v46 = vpop.permute.xlu0 %793  ;;  %933 = vst.msk [vmem:[#allocation2 + $0x20] sm:$0xff] %vm928_vm7, %v889_v45 }
  0xeb   : > { %837 = vst.msk [vmem:[#allocation2 + $0x28] sm:$0xff] %vm831_vm6, %v794_v46  ;;  %421 = vrot.lane.b32.xlu1 %v1585_v35, %s1784_s27 }
  0xec   : > { %326 = vrot.lane.b32.xlu0 %v1570_v36, %s1785_s28 }
  0xed   : > { %v601_v48 = vpop.permute.xlu1 %600 }
  0xee   : > { %v506_v49 = vpop.permute.xlu0 %505  ;;  %643 = vst.msk [vmem:[#allocation2 + $0x30] sm:$0xff] %vm636_vm4, %v601_v48 }
  0xef   : > { %547 = vst.msk [vmem:[#allocation2 + $0x38] sm:$0xff] %vm539_vm3, %v506_v49  ;;  %807 = vrot.lane.b32.xlu1 %v1555_v47, %s1789_s5 }
  0xf0   : > { %711 = vrot.lane.b32.xlu0 %v1586_v37, %s1788_s4 }
  0xf1   : > { %v986_v50 = vpop.permute.xlu1 %985 }
  0xf2   : > { %v891_v51 = vpop.permute.xlu0 %890  ;;  %1030 = vst.msk [vmem:[#allocation2 + $0x20] sm:$0xff] %vm1025_vm8, %v986_v50 }
  0xf3   : > { %934 = vst.msk [vmem:[#allocation2 + $0x28] sm:$0xff] %vm928_vm7, %v891_v51  ;;  %519 = vrot.lane.b32.xlu1 %v1555_v47, %s1786_s29 }
  0xf4   : > { %423 = vrot.lane.b32.xlu0 %v1586_v37, %s1784_s27  ;;  %s1491_s27 = sshll.u32 %s2345_s13, 5 }
  0xf5   : > { %v603_v54 = vpop.permute.xlu1 %602  ;;  %s219_s28 = sadd.s32 %s1491_s27, %s1490_s12 }
  0xf6   : > { %v313_v55 = vpop.permute.xlu0 %312  ;;  %644 = vst.msk [vmem:[#allocation2 + $0x38] sm:$0xff] %vm636_vm4, %v603_v54 }
  0xf7   : > { %353 = vst.msk [vmem:[#allocation2 + $0x40] sm:$0xff] %vm344_vm1, %v313_v55  ;;  %904 = vrot.lane.b32.xlu1 %v1571_v53, %s1790_s22 }
  0xf8   : > { %809 = vrot.lane.b32.xlu0 %v1556_v52, %s1789_s5 }
  0xf9   : > { %v988_v56 = vpop.permute.xlu1 %987  ;;  %v1046_v58 = vld [vmem:[#allocation2 + $0x20] sm:$0xff] }
  0xfa   : > { %v698_v57 = vpop.permute.xlu0 %697  ;;  %1031 = vst.msk [vmem:[#allocation2 + $0x28] sm:$0xff] %vm1025_vm8, %v988_v56  ;;  %1658 = vmatprep.mubr.msk.f32.mxu0 %vm1067_vm9, %v1046_v58 }
  0xfb   : > { %740 = vst.msk [vmem:[#allocation2 + $0x30] sm:$0xff] %vm733_vm5, %v698_v57  ;;  %616 = vrot.lane.b32.xlu1 %v1571_v53, %s1787_s30 }
  0xfc   : > { %521 = vrot.lane.b32.xlu0 %v1556_v52, %s1786_s29  ;;  %s1492_s29 = sshll.u32 %s219_s28, 3 }
  0xfd   : > { %v410_v61 = vpop.permute.xlu1 %409 }
  0xfe   : > { %v315_v62 = vpop.permute.xlu0 %314  ;;  %450 = vst.msk [vmem:[#allocation2 + $0x40] sm:$0xff] %vm441_vm2, %v410_v61 }
  0xff   : > { %354 = vst.msk [vmem:[#allocation2 + $0x48] sm:$0xff] %vm344_vm1, %v315_v62  ;;  %1001 = vrot.lane.b32.xlu1 %v1587_v60, %s1791_s9 }
 0x100   : > { %906 = vrot.lane.b32.xlu0 %v1572_v59, %s1790_s22 }
 0x101   : > { %v796_v63 = vpop.permute.xlu1 %795  ;;  %v1047_v1 = vld [vmem:[#allocation2 + $0x28] sm:$0xff] }
 0x102   : > { %v700_v0 = vpop.permute.xlu0 %699  ;;  %838 = vst.msk [vmem:[#allocation2 + $0x30] sm:$0xff] %vm831_vm6, %v796_v63  ;;  %1659 = vmatmul.mubr.msk.f32.gmra.mxu0 %vm1067_vm9, %v1047_v1 }
 0x103   : > { %741 = vst.msk [vmem:[#allocation2 + $0x38] sm:$0xff] %vm733_vm5, %v700_v0  ;;  %713 = vrot.lane.b32.xlu1 %v1587_v60, %s1788_s4 }
 0x104   : > { %618 = vrot.lane.b32.xlu0 %v1572_v59, %s1787_s30 }
 0x105   : > { %v508_v3 = vpop.permute.xlu1 %507 }
 0x106   : > { %v412_v4 = vpop.permute.xlu0 %411  ;;  %548 = vst.msk [vmem:[#allocation2 + $0x40] sm:$0xff] %vm539_vm3, %v508_v3 }
 0x107   : > { %451 = vst.msk [vmem:[#allocation2 + $0x48] sm:$0xff] %vm441_vm2, %v412_v4  ;;  %715 = vrot.lane.b32.xlu1 %v1588_v2, %s1788_s4 }
 0x108   : > { %1003 = vrot.lane.b32.xlu0 %v1588_v2, %s1791_s9 }
 0x109   : > { %v893_v7 = vpop.permute.xlu1 %892 }
 0x10a   : > { %v798_v8 = vpop.permute.xlu0 %797  ;;  %935 = vst.msk [vmem:[#allocation2 + $0x30] sm:$0xff] %vm928_vm7, %v893_v7 }
 0x10b   : > { %839 = vst.msk [vmem:[#allocation2 + $0x38] sm:$0xff] %vm831_vm6, %v798_v8  ;;  %813 = vrot.lane.b32.xlu1 %v1558_v6, %s1789_s5 }
 0x10c   : > { %811 = vrot.lane.b32.xlu0 %v1557_v5, %s1789_s5  ;;  %s2285_s5 = scalar_lea.vmem %s2332_s2, %s1492_s29 }
 0x10d   : > { %v605_v11 = vpop.permute.xlu1 %604 }
 0x10e   : > { %v510_v12 = vpop.permute.xlu0 %509  ;;  %645 = vst.msk [vmem:[#allocation2 + $0x40] sm:$0xff] %vm636_vm4, %v605_v11 }
 0x10f   : > { %549 = vst.msk [vmem:[#allocation2 + $0x48] sm:$0xff] %vm539_vm3, %v510_v12  ;;  %910 = vrot.lane.b32.xlu1 %v1574_v10, %s1790_s22 }
 0x110   : > { %908 = vrot.lane.b32.xlu0 %v1573_v9, %s1790_s22  ;;  %s1493_s22 = sshll.u32 %s2345_s13, 1 }
 0x111   : > { %v990_v15 = vpop.permute.xlu1 %989  ;;  %s228_s23 = sadd.s32 %s1493_s22, %s1848_s19 }
 0x112   : > { %v895_v16 = vpop.permute.xlu0 %894  ;;  %1032 = vst.msk [vmem:[#allocation2 + $0x30] sm:$0xff] %vm1025_vm8, %v990_v15  ;;  %s1494_s24 = sshll.u32 %s228_s23, 1 }
 0x113   : > { %936 = vst.msk [vmem:[#allocation2 + $0x38] sm:$0xff] %vm928_vm7, %v895_v16  ;;  %1007 = vrot.lane.b32.xlu1 %v1590_v14, %s1791_s9  ;;  %s230_s7 = scalar_lea.vmem %s2333_s3, %s1494_s24 }
 0x114   : > { %1005 = vrot.lane.b32.xlu0 %v1589_v13, %s1791_s9 }
 0x115   : > { %v607_v17 = vpop.permute.xlu1 %606 }
 0x116   : > { %v317_v18 = vpop.permute.xlu0 %316  ;;  %646 = vst.msk [vmem:[#allocation2 + $0x48] sm:$0xff] %vm636_vm4, %v607_v17 }
 0x117   : > { %355 = vst.msk [vmem:[#allocation2 + $0x50] sm:$0xff] %vm344_vm1, %v317_v18 }
 0x119   : > { %v992_v19 = vpop.permute.xlu1 %991  ;;  %v1048_v21 = vld [vmem:[#allocation2 + $0x30] sm:$0xff] }
 0x11a   : > { %v702_v20 = vpop.permute.xlu0 %701  ;;  %1033 = vst.msk [vmem:[#allocation2 + $0x38] sm:$0xff] %vm1025_vm8, %v992_v19  ;;  %1661 = vmatprep.mubr.msk.f32.mxu0 %vm1067_vm9, %v1048_v21 }
 0x11b   : > { %742 = vst.msk [vmem:[#allocation2 + $0x40] sm:$0xff] %vm733_vm5, %v702_v20 }
 0x11d   : > { %v414_v22 = vpop.permute.xlu1 %413 }
 0x11e   : > { %v319_v23 = vpop.permute.xlu0 %318  ;;  %452 = vst.msk [vmem:[#allocation2 + $0x50] sm:$0xff] %vm441_vm2, %v414_v22 }
 0x11f   : > { %356 = vst.msk [vmem:[#allocation2 + $0x58] sm:$0xff] %vm344_vm1, %v319_v23 }
 0x121   : > { %v800_v24 = vpop.permute.xlu1 %799  ;;  %v1049_v26 = vld [vmem:[#allocation2 + $0x38] sm:$0xff] }
 0x122   : > { %v704_v25 = vpop.permute.xlu0 %703  ;;  %840 = vst.msk [vmem:[#allocation2 + $0x40] sm:$0xff] %vm831_vm6, %v800_v24  ;;  %1662 = vmatmul.mubr.msk.f32.gmra.mxu0 %vm1067_vm9, %v1049_v26 }
 0x123   : > { %743 = vst.msk [vmem:[#allocation2 + $0x48] sm:$0xff] %vm733_vm5, %v704_v25 }
 0x125   : > { %v512_v27 = vpop.permute.xlu1 %511 }
 0x126   : > { %v416_v28 = vpop.permute.xlu0 %415  ;;  %550 = vst.msk [vmem:[#allocation2 + $0x50] sm:$0xff] %vm539_vm3, %v512_v27 }
 0x127   : > { %453 = vst.msk [vmem:[#allocation2 + $0x58] sm:$0xff] %vm441_vm2, %v416_v28 }
 0x129   : > { %v897_v29 = vpop.permute.xlu1 %896 }
 0x12a   : > { %v802_v30 = vpop.permute.xlu0 %801  ;;  %937 = vst.msk [vmem:[#allocation2 + $0x40] sm:$0xff] %vm928_vm7, %v897_v29 }
 0x12b   : > { %841 = vst.msk [vmem:[#allocation2 + $0x48] sm:$0xff] %vm831_vm6, %v802_v30 }
 0x12d   : > { %v609_v31 = vpop.permute.xlu1 %608 }
 0x12e   : > { %v514_v32 = vpop.permute.xlu0 %513  ;;  %647 = vst.msk [vmem:[#allocation2 + $0x50] sm:$0xff] %vm636_vm4, %v609_v31 }
 0x12f   : > { %551 = vst.msk [vmem:[#allocation2 + $0x58] sm:$0xff] %vm539_vm3, %v514_v32 }
 0x131   : > { %v994_v33 = vpop.permute.xlu1 %993 }
 0x132   : > { %v899_v34 = vpop.permute.xlu0 %898  ;;  %1034 = vst.msk [vmem:[#allocation2 + $0x40] sm:$0xff] %vm1025_vm8, %v994_v33 }
 0x133   : > { %938 = vst.msk [vmem:[#allocation2 + $0x48] sm:$0xff] %vm928_vm7, %v899_v34 }
 0x135   : > { %v611_v35 = vpop.permute.xlu1 %610 }
 0x136   : > { %v321_v36 = vpop.permute.xlu0 %320  ;;  %648 = vst.msk [vmem:[#allocation2 + $0x58] sm:$0xff] %vm636_vm4, %v611_v35 }
 0x137   : > { %357 = vst.msk [vmem:[#allocation2 + $0x60] sm:$0xff] %vm344_vm1, %v321_v36 }
 0x139   : > { %v996_v38 = vpop.permute.xlu1 %995  ;;  %v1050_v40 = vld [vmem:[#allocation2 + $0x40] sm:$0xff] }
 0x13a   : > { %v706_v39 = vpop.permute.xlu0 %705  ;;  %1035 = vst.msk [vmem:[#allocation2 + $0x48] sm:$0xff] %vm1025_vm8, %v996_v38  ;;  %1664 = vmatprep.mubr.msk.f32.mxu1 %vm1067_vm9, %v1050_v40 }
 0x13b   : > { %744 = vst.msk [vmem:[#allocation2 + $0x50] sm:$0xff] %vm733_vm5, %v706_v39 }
 0x13d   : > { %v418_v41 = vpop.permute.xlu1 %417 }
 0x13e   : > { %v323_v42 = vpop.permute.xlu0 %322  ;;  %454 = vst.msk [vmem:[#allocation2 + $0x60] sm:$0xff] %vm441_vm2, %v418_v41 }
 0x13f   : > { %358 = vst.msk [vmem:[#allocation2 + $0x68] sm:$0xff] %vm344_vm1, %v323_v42 }
 0x141   : > { %v804_v37 = vpop.permute.xlu1 %803  ;;  %v1051_v44 = vld [vmem:[#allocation2 + $0x48] sm:$0xff] }
 0x142   : > { %v708_v43 = vpop.permute.xlu0 %707  ;;  %842 = vst.msk [vmem:[#allocation2 + $0x50] sm:$0xff] %vm831_vm6, %v804_v37  ;;  %1665 = vmatmul.mubr.msk.f32.vlgmr.msra.gmra.mxu1 %vm1067_vm9, %v1051_v44 }
 0x143   : > { %745 = vst.msk [vmem:[#allocation2 + $0x58] sm:$0xff] %vm733_vm5, %v708_v43 }
 0x145   : > { %v516_v45 = vpop.permute.xlu1 %515 }
 0x146   : > { %v420_v46 = vpop.permute.xlu0 %419  ;;  %552 = vst.msk [vmem:[#allocation2 + $0x60] sm:$0xff] %vm539_vm3, %v516_v45 }
 0x147   : > { %455 = vst.msk [vmem:[#allocation2 + $0x68] sm:$0xff] %vm441_vm2, %v420_v46 }
 0x149   : > { %v901_v47 = vpop.permute.xlu1 %900 }
 0x14a   : > { %v806_v48 = vpop.permute.xlu0 %805  ;;  %939 = vst.msk [vmem:[#allocation2 + $0x50] sm:$0xff] %vm928_vm7, %v901_v47 }
 0x14b   : > { %843 = vst.msk [vmem:[#allocation2 + $0x58] sm:$0xff] %vm831_vm6, %v806_v48 }
 0x14d   : > { %v613_v49 = vpop.permute.xlu1 %612 }
 0x14e   : > { %v518_v50 = vpop.permute.xlu0 %517  ;;  %649 = vst.msk [vmem:[#allocation2 + $0x60] sm:$0xff] %vm636_vm4, %v613_v49 }
 0x14f   : > { %553 = vst.msk [vmem:[#allocation2 + $0x68] sm:$0xff] %vm539_vm3, %v518_v50 }
 0x151   : > { %v998_v51 = vpop.permute.xlu1 %997 }
 0x152   : > { %v903_v52 = vpop.permute.xlu0 %902  ;;  %1036 = vst.msk [vmem:[#allocation2 + $0x50] sm:$0xff] %vm1025_vm8, %v998_v51 }
 0x153   : > { %940 = vst.msk [vmem:[#allocation2 + $0x58] sm:$0xff] %vm928_vm7, %v903_v52 }
 0x155   : > { %v615_v53 = vpop.permute.xlu1 %614 }
 0x156   : > { %v325_v54 = vpop.permute.xlu0 %324  ;;  %650 = vst.msk [vmem:[#allocation2 + $0x68] sm:$0xff] %vm636_vm4, %v615_v53 }
 0x157   : > { %359 = vst.msk [vmem:[#allocation2 + $0x70] sm:$0xff] %vm344_vm1, %v325_v54 }
 0x159   : > { %v1000_v55 = vpop.permute.xlu1 %999  ;;  %v1052_v57 = vld [vmem:[#allocation2 + $0x50] sm:$0xff] }
 0x15a   : > { %v710_v56 = vpop.permute.xlu0 %709  ;;  %1037 = vst.msk [vmem:[#allocation2 + $0x58] sm:$0xff] %vm1025_vm8, %v1000_v55  ;;  %1667 = vmatprep.mubr.msk.f32.mxu1 %vm1067_vm9, %v1052_v57 }
 0x15b   : > { %746 = vst.msk [vmem:[#allocation2 + $0x60] sm:$0xff] %vm733_vm5, %v710_v56 }
 0x15d   : > { %v422_v59 = vpop.permute.xlu1 %421 }
 0x15e   : > { %v327_v58 = vpop.permute.xlu0 %326  ;;  %456 = vst.msk [vmem:[#allocation2 + $0x70] sm:$0xff] %vm441_vm2, %v422_v59 }
 0x15f   : > { %360 = vst.msk [vmem:[#allocation2 + $0x78] sm:$0xff] %vm344_vm1, %v327_v58 }
 0x161   : > { %v808_v61 = vpop.permute.xlu1 %807  ;;  %v1053_v62 = vld [vmem:[#allocation2 + $0x58] sm:$0xff] }
 0x162   : > { %v712_v60 = vpop.permute.xlu0 %711  ;;  %844 = vst.msk [vmem:[#allocation2 + $0x60] sm:$0xff] %vm831_vm6, %v808_v61  ;;  %1668 = vmatmul.mubr.msk.f32.gmra.mxu1 %vm1067_vm9, %v1053_v62 }
 0x163   : > { %747 = vst.msk [vmem:[#allocation2 + $0x68] sm:$0xff] %vm733_vm5, %v712_v60 }
 0x165   : > { %v520_v0 = vpop.permute.xlu1 %519 }
 0x166   : > { %v424_v63 = vpop.permute.xlu0 %423  ;;  %554 = vst.msk [vmem:[#allocation2 + $0x70] sm:$0xff] %vm539_vm3, %v520_v0 }
 0x167   : > { %457 = vst.msk [vmem:[#allocation2 + $0x78] sm:$0xff] %vm441_vm2, %v424_v63 }
 0x169   : > { %v905_v2 = vpop.permute.xlu1 %904 }
 0x16a   : > { %v810_v1 = vpop.permute.xlu0 %809  ;;  %941 = vst.msk [vmem:[#allocation2 + $0x60] sm:$0xff] %vm928_vm7, %v905_v2 }
 0x16b   : > { %845 = vst.msk [vmem:[#allocation2 + $0x68] sm:$0xff] %vm831_vm6, %v810_v1 }
 0x16d   : > { %v617_v4 = vpop.permute.xlu1 %616 }
 0x16e   : > { %v522_v3 = vpop.permute.xlu0 %521  ;;  %651 = vst.msk [vmem:[#allocation2 + $0x70] sm:$0xff] %vm636_vm4, %v617_v4 }
 0x16f   : > { %555 = vst.msk [vmem:[#allocation2 + $0x78] sm:$0xff] %vm539_vm3, %v522_v3 }
 0x171   : > { %v1002_v6 = vpop.permute.xlu1 %1001 }
 0x172   : > { %v907_v5 = vpop.permute.xlu0 %906  ;;  %1038 = vst.msk [vmem:[#allocation2 + $0x60] sm:$0xff] %vm1025_vm8, %v1002_v6 }
 0x173   : > { %942 = vst.msk [vmem:[#allocation2 + $0x68] sm:$0xff] %vm928_vm7, %v907_v5 }
 0x175   : > { %v714_v8 = vpop.permute.xlu1 %713 }
 0x176   : > { %v619_v7 = vpop.permute.xlu0 %618  ;;  %748 = vst.msk [vmem:[#allocation2 + $0x70] sm:$0xff] %vm733_vm5, %v714_v8 }
 0x177   : > { %652 = vst.msk [vmem:[#allocation2 + $0x78] sm:$0xff] %vm636_vm4, %v619_v7 }
 0x179   : > { %v716_v10 = vpop.permute.xlu1 %715  ;;  %v1054_v11 = vld [vmem:[#allocation2 + $0x60] sm:$0xff] }
 0x17a   : > { %v1004_v9 = vpop.permute.xlu0 %1003  ;;  %749 = vst.msk [vmem:[#allocation2 + $0x78] sm:$0xff] %vm733_vm5, %v716_v10  ;;  %1670 = vmatprep.mubr.msk.f32.mxu1 %vm1067_vm9, %v1054_v11 }
 0x17b   : > { %1039 = vst.msk [vmem:[#allocation2 + $0x68] sm:$0xff] %vm1025_vm8, %v1004_v9 }
 0x17d   : > { %v814_v13 = vpop.permute.xlu1 %813 }
 0x17e   : > { %v812_v12 = vpop.permute.xlu0 %811  ;;  %847 = vst.msk [vmem:[#allocation2 + $0x78] sm:$0xff] %vm831_vm6, %v814_v13 }
 0x17f   : > { %846 = vst.msk [vmem:[#allocation2 + $0x70] sm:$0xff] %vm831_vm6, %v812_v12 }
 0x181   : > { %v911_v15 = vpop.permute.xlu1 %910 }
 0x182   : > { %v909_v14 = vpop.permute.xlu0 %908  ;;  %v1055_v16 = vld [vmem:[#allocation2 + $0x68] sm:$0xff]  ;;  %944 = vst.msk [vmem:[#allocation2 + $0x78] sm:$0xff] %vm928_vm7, %v911_v15  ;;  %v1654_v17 = vpop.f32.mrf.mxu0 }
 0x183   : > { %943 = vst.msk [vmem:[#allocation2 + $0x70] sm:$0xff] %vm928_vm7, %v909_v14  ;;  %1671 = vmatmul.mubr.msk.f32.gmra.mxu1 %vm1067_vm9, %v1055_v16  ;;  %1262 = vst [vmem:[%s2285_s5 + $0x8] sm:$0xff] %v1654_v17  ;;  %v1300_v18 = vmul.f32 %v1654_v17, %v1654_v17 }
 0x184   : > { %v1182_v19 = vpop.f32.mrf.mxu0 }
 0x185   : > { %1261 = vst [vmem:[%s2285_s5] sm:$0xff] %v1182_v19  ;;  %v1277_v20 = vadd.f32 %v1654_v17, %v1182_v19  ;;  %v1299_v21 = vmul.f32 %v1182_v19, %v1182_v19  ;;  %v1008_v23 = vpop.permute.xlu1 %1007 }
 0x186   : > { %v1006_v22 = vpop.permute.xlu0 %1005  ;;  %1041 = vst.msk [vmem:[#allocation2 + $0x78] sm:$0xff] %vm1025_vm8, %v1008_v23 }
 0x187   : > { %1040 = vst.msk [vmem:[#allocation2 + $0x70] sm:$0xff] %vm1025_vm8, %v1006_v22  ;;  %v1315_v24 = vadd.f32 %v1300_v18, %v1299_v21 }
 0x18d   : > { %v1057_v26 = vld [vmem:[#allocation2 + $0x78] sm:$0xff] }
 0x18e   : > { %v1056_v25 = vld [vmem:[#allocation2 + $0x70] sm:$0xff] }
 0x18f   : > { %1673 = vmatprep.mubr.msk.f32.mxu1 %vm1067_vm9, %v1056_v25 }
 0x190   : > { %1674 = vmatmul.mubr.msk.f32.gmra.mxu1 %vm1067_vm9, %v1057_v26 }
 0x1a2   : > { %v1657_v27 = vpop.f32.mrf.mxu0 }
 0x1a3   : > { %1264 = vst [vmem:[%s2285_s5 + $0x18] sm:$0xff] %v1657_v27  ;;  %v1302_v31 = vmul.f32 %v1657_v27, %v1657_v27 }
 0x1a4   : > { %v1192_v28 = vpop.f32.mrf.mxu0 }
 0x1a5   : > { %1263 = vst [vmem:[%s2285_s5 + $0x10] sm:$0xff] %v1192_v28  ;;  %v1278_v29 = vadd.f32 %v1277_v20, %v1192_v28  ;;  %v1301_v30 = vmul.f32 %v1192_v28, %v1192_v28 }
 0x1a7   : > { %v1316_v32 = vadd.f32 %v1315_v24, %v1301_v30  ;;  %v1279_v33 = vadd.f32 %v1657_v27, %v1278_v29 }
 0x1a9   : > { %v1317_v34 = vadd.f32 %v1316_v32, %v1302_v31 }
 0x1c2   : > { %v1660_v35 = vpop.f32.mrf.mxu0 }
 0x1c3   : > { %1266 = vst [vmem:[%s2285_s5 + $0x28] sm:$0xff] %v1660_v35  ;;  %v1304_v40 = vmul.f32 %v1660_v35, %v1660_v35 }
 0x1c4   : > { %v1202_v36 = vpop.f32.mrf.mxu0 }
 0x1c5   : > { %1265 = vst [vmem:[%s2285_s5 + $0x20] sm:$0xff] %v1202_v36  ;;  %v1280_v38 = vadd.f32 %v1279_v33, %v1202_v36  ;;  %v1303_v39 = vmul.f32 %v1202_v36, %v1202_v36 }
 0x1c7   : > { %v1318_v41 = vadd.f32 %v1317_v34, %v1303_v39  ;;  %v1281_v42 = vadd.f32 %v1660_v35, %v1280_v38 }
 0x1c9   : > { %v1319_v37 = vadd.f32 %v1318_v41, %v1304_v40 }
 0x1e2   : > { %v1663_v43 = vpop.f32.mrf.mxu0 }
 0x1e3   : > { %1268 = vst [vmem:[%s2285_s5 + $0x38] sm:$0xff] %v1663_v43  ;;  %v1306_v47 = vmul.f32 %v1663_v43, %v1663_v43 }
 0x1e4   : > { %v1212_v44 = vpop.f32.mrf.mxu0 }
 0x1e5   : > { %1267 = vst [vmem:[%s2285_s5 + $0x30] sm:$0xff] %v1212_v44  ;;  %v1282_v45 = vadd.f32 %v1281_v42, %v1212_v44  ;;  %v1305_v46 = vmul.f32 %v1212_v44, %v1212_v44 }
 0x1e7   : > { %v1283_v48 = vadd.f32 %v1663_v43, %v1282_v45  ;;  %v1320_v49 = vadd.f32 %v1319_v37, %v1305_v46 }
 0x1e9   : > { %v1321_v50 = vadd.f32 %v1320_v49, %v1306_v47 }
 0x202   : > { %v1666_v51 = vpop.f32.mrf.mxu1 }
 0x203   : > { %1270 = vst [vmem:[%s2285_s5 + $0x48] sm:$0xff] %v1666_v51  ;;  %v1308_v55 = vmul.f32 %v1666_v51, %v1666_v51 }
 0x204   : > { %v1222_v52 = vpop.f32.mrf.mxu1 }
 0x205   : > { %1269 = vst [vmem:[%s2285_s5 + $0x40] sm:$0xff] %v1222_v52  ;;  %v1284_v53 = vadd.f32 %v1283_v48, %v1222_v52  ;;  %v1307_v54 = vmul.f32 %v1222_v52, %v1222_v52 }
 0x207   : > { %v1322_v56 = vadd.f32 %v1321_v50, %v1307_v54  ;;  %v1285_v57 = vadd.f32 %v1666_v51, %v1284_v53 }
 0x209   : > { %v1323_v58 = vadd.f32 %v1322_v56, %v1308_v55 }
 0x222   : > { %v1669_v59 = vpop.f32.mrf.mxu1 }
 0x223   : > { %1272 = vst [vmem:[%s2285_s5 + $0x58] sm:$0xff] %v1669_v59  ;;  %v1310_v2 = vmul.f32 %v1669_v59, %v1669_v59 }
 0x224   : > { %v1232_v60 = vpop.f32.mrf.mxu1 }
 0x225   : > { %1271 = vst [vmem:[%s2285_s5 + $0x50] sm:$0xff] %v1232_v60  ;;  %v1309_v62 = vmul.f32 %v1232_v60, %v1232_v60  ;;  %v1286_v0 = vadd.f32 %v1285_v57, %v1232_v60 }
 0x227   : > { %v1324_v1 = vadd.f32 %v1323_v58, %v1309_v62  ;;  %v1287_v3 = vadd.f32 %v1669_v59, %v1286_v0 }
 0x229   : > { %v1325_v6 = vadd.f32 %v1324_v1, %v1310_v2 }
 0x243   : > { %v1672_v61 = vpop.f32.mrf.mxu1 }
 0x244   : > { %1274 = vst [vmem:[%s2285_s5 + $0x68] sm:$0xff] %v1672_v61  ;;  %v1312_v9 = vmul.f32 %v1672_v61, %v1672_v61 }
 0x245   : > { %v1242_v63 = vpop.f32.mrf.mxu1 }
 0x246   : > { %1273 = vst [vmem:[%s2285_s5 + $0x60] sm:$0xff] %v1242_v63  ;;  %v1311_v4 = vmul.f32 %v1242_v63, %v1242_v63  ;;  %v1288_v5 = vadd.f32 %v1287_v3, %v1242_v63 }
 0x248   : > { %v1326_v7 = vadd.f32 %v1325_v6, %v1311_v4  ;;  %v1289_v10 = vadd.f32 %v1672_v61, %v1288_v5 }
 0x24a   : > { %v1327_v14 = vadd.f32 %v1326_v7, %v1312_v9 }
 0x250   : > { %v1675_v8 = vpop.f32.mrf.mxu1 }
 0x251   : > { %1276 = vst [vmem:[%s2285_s5 + $0x78] sm:$0xff] %v1675_v8  ;;  %v1314_v15 = vmul.f32 %v1675_v8, %v1675_v8 }
 0x252   : > { %v1252_v11 = vpop.f32.mrf.mxu1 }
 0x253   : > { %1275 = vst [vmem:[%s2285_s5 + $0x70] sm:$0xff] %v1252_v11  ;;  %v1290_v12 = vadd.f32 %v1289_v10, %v1252_v11  ;;  %v1313_v13 = vmul.f32 %v1252_v11, %v1252_v11 }
 0x255   : > { %v1291_v16 = vadd.f32 %v1675_v8, %v1290_v12  ;;  %v1328_v17 = vadd.f32 %v1327_v14, %v1313_v13 }
 0x257   : > { %v1292_v18 = vrot.slane %v1291_v16, 4  ;;  %v1329_v19 = vadd.f32 %v1328_v17, %v1314_v15 }
 0x259   : > { %v1293_v20 = vadd.f32 %v1292_v18, %v1291_v16  ;;  %v1330_v21 = vrot.slane %v1329_v19, 4 }
 0x25b   : > { %v1294_v22 = vrot.slane %v1293_v20, 2  ;;  %v1331_v23 = vadd.f32 %v1330_v21, %v1329_v19 }
 0x25d   : > { %v1295_v24 = vadd.f32 %v1294_v22, %v1293_v20  ;;  %v1332_v25 = vrot.slane %v1331_v23, 2 }
 0x25f   : > { %v1296_v26 = vrot.slane %v1295_v24, 1  ;;  %v1333_v27 = vadd.f32 %v1332_v25, %v1331_v23 }
 0x261   : > { %v1297_v28 = vadd.f32 %v1296_v26, %v1295_v24  ;;  %v1334_v29 = vrot.slane %v1333_v27, 1 }
 0x263   : > { %1298 = vst [vmem:[%s230_s7] sm:$0x1] %v1297_v28  ;;  %v1335_v30 = vadd.f32 %v1334_v29, %v1333_v27 }
 0x265   : > { %1336 = vst [vmem:[%s230_s7 + $0x1] sm:$0x1] %v1335_v30 }
 0x266 PF: > { %s14_s16 = sadd.s32 1, %s1782_s16   ;;  %s2334_s12 = smov %s1774_s14 }
 0x267   : > { %p11_p8 = scmp.ge.s32.totalorder %s14_s16, 6   ;;  %s2335_s13 = smov %s1778_s15 }
 0x268   : > { %s2336_s14 = smov %s2339_s17  ;;  %s2337_s15 = smov %s2343_s18 }
 0x269   :  { %13 = sbr.rel (!%p11_p8) target bundleno = 3 (0x3), region = 72 }

</bundles_post_ra>
